<compile_context>
chip_gen: v6e
topology: v6e:2x2x1
jax: 0.10.0
libtpu: 0.0.40
codegen_flags: <defaults>
</compile_context>

<pallas_src>
from functools import partial

import numpy as np
import jax
import jax.numpy as jnp
from jax.experimental import pallas as pl
from jax.experimental.pallas import tpu as pltpu

_CLS_MEAN_SIZE = np.array(
    [[1.76255119, 0.66068622, 0.84422524],
     [1.52563191462, 1.62856739989, 3.88311640418],
     [1.73698127, 0.59706367, 1.76282397]], dtype=np.float32)

_VMEM = pl.BlockSpec(memory_space=pltpu.MemorySpace.VMEM)


def _round_up(x, m):
    return ((x + m - 1) // m) * m


# ----------------------------------------------------------------------------
# Kernel A: geometry pipeline (affine_transform + project_image_to_rect +
# generate_corners3d, x/z only), all 3 replicated variants batched on the
# lane axis.  Input feat: (18, S, 128) feature planes; per lane one
# (variant, object) pair.  Planes:
#   0 center_u, 1 center_v, 2 off_u, 3 off_v, 4 depth,
#   5..10 trans_inv (row-major 2x3), 11 f_u, 12 c_u, 13 P[0,3],
#   14 w_res, 15 l_res, 16 ry, 17 cls
# Output: (10, S, 128) = [x of corners 0..4 ; z of corners 0..4].
# ----------------------------------------------------------------------------
def _corners_kernel(f_ref, out_ref):
    u = (f_ref[0] + f_ref[2]) * 4.0
    v = (f_ref[1] + f_ref[3]) * 4.0
    d = f_ref[4]
    px = f_ref[5] * u + f_ref[6] * v + f_ref[7]          # affine_transform, x row

    f_u = f_ref[11]
    c_u = f_ref[12]
    p03 = f_ref[13]
    inv_fu = 1.0 / f_u                                    # one reciprocal, reused
    X = (px - c_u) * d * inv_fu - p03 * inv_fu            # project_image_to_rect (x)
    Z = d

    cls = f_ref[17]
    mean_w = jnp.where(cls < 0.5, 0.66068622,
                       jnp.where(cls < 1.5, 1.62856739989, 0.59706367))
    mean_l = jnp.where(cls < 0.5, 0.84422524,
                       jnp.where(cls < 1.5, 3.88311640418, 1.76282397))
    hw = 0.5 * (f_ref[14] + mean_w)
    hl = 0.5 * (f_ref[15] + mean_l)
    ry = f_ref[16]
    cr = jnp.cos(ry)
    sr = jnp.sin(ry)
    clx = cr * hl
    slx = sr * hl
    cwx = cr * hw
    swx = sr * hw
    # corner offsets: x = cr*l*a + sr*w*b ; z = -sr*l*a + cr*w*b
    # with a = [.5,.5,-.5,-.5], b = [.5,-.5,-.5,.5] (scalar arithmetic per corner)
    out_ref[0] = X
    out_ref[1] = X + clx + swx
    out_ref[2] = X + clx - swx
    out_ref[3] = X - clx - swx
    out_ref[4] = X - clx + swx
    out_ref[5] = Z
    out_ref[6] = Z - slx + cwx
    out_ref[7] = Z - slx - cwx
    out_ref[8] = Z + slx - cwx
    out_ref[9] = Z + slx + cwx


# ----------------------------------------------------------------------------
# Kernel B: fused applyHomography + range mask + smooth-L1 partial reduction.
# Single packed slab (32, S, 128); per lane one ground-truth corner point.
#   0 src_u, 1 src_v, 2 Qgt_x, 3 Qgt_z, 4 validity,
#   5..13 / 14..22 / 23..31: per-point 3x3 homography rows for variant 0/1/2.
# Output: (8, 128) lane-dense block:
#   rows 0..2 per-lane smooth-L1 partial sums (variant 0..2),
#   rows 3..5 per-lane mask counts, rows 6..7 zero padding.
# ----------------------------------------------------------------------------
def _reproj_loss_kernel(s_ref, out_ref):
    x = s_ref[0]
    y = s_ref[1]
    qx = s_ref[2]
    qz = s_ref[3]
    vld = s_ref[4] > 0.5

    sums = []
    cnts = []
    for k in range(3):                                     # 3 replicated variants
        b = 5 + 9 * k
        nx = x * s_ref[b + 0] + y * s_ref[b + 1] + s_ref[b + 2]
        ny = x * s_ref[b + 3] + y * s_ref[b + 4] + s_ref[b + 5]
        nz = x * s_ref[b + 6] + y * s_ref[b + 7] + s_ref[b + 8]
        inv_den = 1.0 / (nz + 1e-10)                       # one reciprocal, two uses
        rx = nx * inv_den
        rz = ny * inv_den
        m = (rx > -45.0) & (rx < 45.0) & (rz > 0.0) & (rz < 80.0) & vld
        dx = rx - qx
        dz = rz - qz
        adx = jnp.abs(dx)
        adz = jnp.abs(dz)
        sl1 = (jnp.where(adx < 1.0, 0.5 * dx * dx, adx - 0.5)
               + jnp.where(adz < 1.0, 0.5 * dz * dz, adz - 0.5))
        sums.append(jnp.sum(jnp.where(m, sl1, 0.0), axis=0, keepdims=True))
        cnts.append(jnp.sum(jnp.where(m, 1.0, 0.0), axis=0, keepdims=True))
    zero = jnp.zeros_like(sums[0])
    out_ref[...] = jnp.concatenate(sums + cnts + [zero, zero], axis=0)   # (8,128)


# ----------------------------------------------------------------------------
# Jitted glue: unpack -> kernel A -> Gram-matrix DLT (eigh) -> kernel B ->
# scalar loss.  Shapes depend only on (B, K): one cached program.
# ----------------------------------------------------------------------------
@partial(jax.jit, static_argnums=(1, 2))
def _homography_loss_impl(packed, B, K):
    f32 = jnp.float32
    BK = B * K
    NT = 3 * BK
    NTPAD = _round_up(NT, 1024)        # S multiple of 8 -> dense (8,128) vregs
    S_NT = NTPAD // 128
    Mv = 5 * BK                        # points per variant (shared across variants)
    MVPAD = _round_up(Mv, 1024)
    S_M = MVPAD // 128
    P = K * 5                          # points per image group

    # ---- unpack the single packed transfer -------------------------------
    center = packed[:, 0:2]
    tgt_off = packed[:, 2:4]
    tgt_dep = packed[:, 4]
    inv6 = packed[:, 5:11]
    calib3 = packed[:, 11:14]
    size_wl = packed[:, 14:16]
    ry = packed[:, 16]
    cls_f = packed[:, 17]
    valid = packed[:, 18]
    pred_off = packed[:, 19:21]
    pred_dep = packed[:, 21]
    Pgt = packed[:, 22:32].reshape(BK, 5, 2)
    Qgt_xz = packed[:, 32:42].reshape(BK, 5, 2)

    # variant order: centerGT_depth_PRED, centerPRED_depth_GT, centerPRED_depth_PRED
    off_stack = jnp.stack([tgt_off, pred_off, pred_off], 0).reshape(NT, 2)
    dep_stack = jnp.stack([pred_dep, tgt_dep, pred_dep], 0).reshape(NT, 1)

    def t3(a):
        return jnp.tile(a, (3, 1))

    feat_cols = jnp.concatenate([
        t3(center), off_stack, dep_stack, t3(inv6), t3(calib3),
        t3(size_wl), t3(ry[:, None]), t3(cls_f[:, None])], axis=1)      # (NT, 18)
    feat = jnp.zeros((18, NTPAD), f32).at[:, :NT].set(feat_cols.T)
    feat = feat.at[11, NT:].set(1.0)     # keep 1/f_u finite in padded lanes
    featA = feat.reshape(18, S_NT, 128)

    qp = pl.pallas_call(
        _corners_kernel,
        out_shape=jax.ShapeDtypeStruct((10, S_NT, 128), f32),
        in_specs=[_VMEM],
        out_specs=_VMEM,
    )(featA)

    qp = qp.reshape(10, NTPAD)[:, :NT].reshape(10, 3, BK)
    Qpred_xz = jnp.stack([jnp.transpose(qp[0:5], (1, 2, 0)),
                          jnp.transpose(qp[5:10], (1, 2, 0))], axis=-1)  # (3,BK,5,2)

    # ---- DLT homography per (variant, image) via the 9x9 Gram matrix ------
    # A^T A is accumulated directly from the DLT row blocks; A itself is
    # never materialized.  Hartley normalization keeps it well conditioned.
    src_pts = Pgt.reshape(B, P, 2)                                       # (B,P,2)
    dst_pts = Qpred_xz.reshape(3, B, P, 2)                               # (3,B,P,2)
    w_pt = jnp.broadcast_to(valid.reshape(B, K, 1), (B, K, 5)).reshape(B, P)

    wsum = jnp.maximum(jnp.sum(w_pt, axis=1), 1.0)                       # (B,)
    src_mean = jnp.sum(src_pts * w_pt[:, :, None], axis=1) / wsum[:, None]
    src_cent = src_pts - src_mean[:, None, :]
    src_dist = jnp.sqrt(jnp.sum(src_cent * src_cent, axis=-1) + 1e-12)
    src_md = jnp.maximum(jnp.sum(src_dist * w_pt, axis=1) / wsum, 1e-6)
    s_src = jnp.sqrt(2.0) / src_md                                       # (B,)
    src_n = src_cent * s_src[:, None, None]

    dst_mean = jnp.sum(dst_pts * w_pt[None, :, :, None], axis=2) / wsum[None, :, None]
    dst_cent = dst_pts - dst_mean[:, :, None, :]
    dst_dist = jnp.sqrt(jnp.sum(dst_cent * dst_cent, axis=-1) + 1e-12)
    dst_md = jnp.maximum(jnp.sum(dst_dist * w_pt[None], axis=2) / wsum[None], 1e-6)
    s_dst = jnp.sqrt(2.0) / dst_md                                       # (3,B)
    dst_n = dst_cent * s_dst[:, :, None, None]

    un = src_n[..., 0]
    vn = src_n[..., 1]
    pvec = jnp.stack([un, vn, jnp.ones_like(un)], axis=-1)               # (B,P,3)
    ppw = (pvec[..., :, None] * pvec[..., None, :]) * w_pt[:, :, None, None]
    S0 = jnp.sum(ppw, axis=1)                                            # (B,3,3)
    xn = dst_n[..., 0]
    zn = dst_n[..., 1]                                                   # (3,B,P)
    Sx = -jnp.einsum('vbp,bpij->vbij', xn, ppw)
    Sz = -jnp.einsum('vbp,bpij->vbij', zn, ppw)
    Sq = jnp.einsum('vbp,bpij->vbij', xn * xn + zn * zn, ppw)
    S0b = jnp.broadcast_to(S0[None], Sx.shape)
    Z33 = jnp.zeros_like(S0b)
    AtA = jnp.concatenate([
        jnp.concatenate([S0b, Z33, Sx], axis=-1),
        jnp.concatenate([Z33, S0b, Sz], axis=-1),
        jnp.concatenate([Sx, Sz, Sq], axis=-1)], axis=-2)                # (3,B,9,9)

    _, V = jnp.linalg.eigh(AtA)            # ascending eigenvalues
    Hn = V[..., :, 0].reshape(3, B, 3, 3)  # null-space vector of A (normalized frame)

    # denormalize: H = T_dst^{-1} @ Hn @ T_src
    Ts = jnp.zeros((B, 3, 3), f32)
    Ts = Ts.at[:, 0, 0].set(s_src).at[:, 1, 1].set(s_src)
    Ts = Ts.at[:, 0, 2].set(-s_src * src_mean[:, 0])
    Ts = Ts.at[:, 1, 2].set(-s_src * src_mean[:, 1])
    Ts = Ts.at[:, 2, 2].set(1.0)
    Tdi = jnp.zeros((3, B, 3, 3), f32)
    Tdi = Tdi.at[:, :, 0, 0].set(1.0 / s_dst).at[:, :, 1, 1].set(1.0 / s_dst)
    Tdi = Tdi.at[:, :, 0, 2].set(dst_mean[..., 0])
    Tdi = Tdi.at[:, :, 1, 2].set(dst_mean[..., 1])
    Tdi = Tdi.at[:, :, 2, 2].set(1.0)
    Hfull = jnp.einsum('vbij,vbjk,bkl->vbil', Tdi, Hn, Ts)
    Hflat = Hfull.reshape(3, B, 9)

    # ---- kernel B packed slab ---------------------------------------------
    H_obj = jnp.repeat(Hflat, K, axis=1)                                 # (3,BK,9)
    H_pt = jnp.repeat(H_obj, 5, axis=1)                                  # (3,Mv,9)
    H_planes = jnp.transpose(H_pt, (0, 2, 1)).reshape(27, Mv)
    src_planes = Pgt.reshape(Mv, 2).T                                    # (2,Mv)
    q_planes = Qgt_xz.reshape(Mv, 2).T                                   # (2,Mv)
    valid_pt = jnp.broadcast_to(valid.reshape(BK, 1), (BK, 5)).reshape(1, Mv)

    slab = jnp.zeros((32, MVPAD), f32).at[:, :Mv].set(
        jnp.concatenate([src_planes, q_planes, valid_pt, H_planes], axis=0))
    slab = slab.reshape(32, S_M, 128)

    part = pl.pallas_call(
        _reproj_loss_kernel,
        out_shape=jax.ShapeDtypeStruct((8, 128), f32),
        in_specs=[_VMEM],
        out_specs=_VMEM,
    )(slab)

    totals = jnp.sum(part, axis=1)                                       # (8,)
    sums = totals[0:3]
    counts = totals[3:6]
    # F.smooth_l1_loss(..., 'mean') over 2*count masked elements, averaged over
    # the 3 replicated losses.  (A zero count gives NaN, matching the PyTorch
    # reference on an empty masked tensor.)
    return jnp.mean(sums / (2.0 * counts))


# ----------------------------------------------------------------------------
# Module equivalent
# ----------------------------------------------------------------------------
class HomographyLossPallas:
    def __init__(self, epoch, calibs, info, logger=None):
        self.epoch = epoch
        self.calibs = np.asarray(calibs, np.float32)                 # (B, 3, 4)
        self.trans_inv = np.asarray(info['trans_inv'], np.float32)   # (B, 2, 3)
        self.logger = logger

    def __call__(self, outputs, targets):
        mask2d = np.asarray(targets['mask_2d'])
        B, K = mask2d.shape
        BK = B * K
        flat_mask = mask2d.reshape(-1).astype(bool)
        valid = flat_mask.astype(np.float32)
        batch_idx = np.repeat(np.arange(B), K)

        center = np.asarray(targets['center_3dto2d'], np.float32).reshape(BK, 2)
        tgt_off = np.asarray(targets['offset_3d'], np.float32).reshape(BK, 2)
        tgt_dep = np.asarray(targets['depth'], np.float32).reshape(BK, -1)[:, 0]
        cls_f = np.asarray(targets['cls_ids']).reshape(BK).astype(np.float32)
        ry = np.asarray(targets['ry'], np.float32).reshape(BK)
        size_wl = np.asarray(targets['size_3d'], np.float32).reshape(BK, 3)[:, 1:3]
        Pgt = np.asarray(targets['Pgt'], np.float32).reshape(BK, 5, 2)
        Qgt_xz = np.asarray(targets['Qgt'], np.float32).reshape(BK, 5, 3)[:, :, 0::2]

        calib = self.calibs[batch_idx]                               # (BK, 3, 4)
        calib3 = np.stack([calib[:, 0, 0], calib[:, 0, 2], calib[:, 0, 3]], 1)
        inv6 = self.trans_inv[batch_idx].reshape(BK, 6)

        # Scatter the compacted network predictions back onto the full static
        # (B*K) object grid (validity weights handle masking downstream).
        # TODO(synk): in real training keep predictions on device and scatter
        #             with a fixed-shape jnp op instead of this host round-trip.
        pred_off = np.zeros((BK, 2), np.float32)
        pred_dep = np.zeros((BK,), np.float32)
        pred_off[flat_mask] = np.asarray(outputs['offset_3d'], np.float32)
        pred_dep[flat_mask] = np.asarray(outputs['depth'], np.float32)[:, 0]

        packed = np.concatenate([
            center, tgt_off, tgt_dep[:, None], inv6, calib3, size_wl,
            ry[:, None], cls_f[:, None], valid[:, None],
            pred_off, pred_dep[:, None],
            Pgt.reshape(BK, 10), Qgt_xz.reshape(BK, 10)], axis=1).astype(np.float32)

        return _homography_loss_impl(jnp.asarray(packed), B, K)


# ----------------------------------------------------------------------------
# Deterministic synthetic data + run
# ----------------------------------------------------------------------------
if __name__ == "__main__":
    key = jax.random.PRNGKey(0)
    B, K, n_valid = 2, 8, 6
    mask_2d = np.zeros((B, K), np.int32)
    mask_2d[:, :n_valid] = 1
    flat_mask = mask_2d.reshape(-1).astype(bool)

    k1, k2, k3, k4, k5, k6, k7 = jax.random.split(key, 7)
    x3d = np.asarray(jax.random.uniform(k1, (B, K), minval=-12.0, maxval=12.0))
    z3d = np.asarray(jax.random.uniform(k2, (B, K), minval=15.0, maxval=45.0))
    ry = np.asarray(jax.random.uniform(k3, (B, K), minval=-np.pi, maxval=np.pi))
    cls_ids = np.asarray(jax.random.randint(k4, (B, K), 0, 3))
    size_res = np.asarray(jax.random.normal(k5, (B, K, 3))) * 0.05
    off_noise = np.asarray(jax.random.normal(k6, (B * K, 2))) * 0.02
    dep_noise = np.asarray(jax.random.normal(k7, (B * K, 1))) * 0.05

    dims = size_res + _CLS_MEAN_SIZE[cls_ids]                    # (B, K, 3) = (h, w, l)
    h = dims[..., 0]
    y3d = 1.6 - h / 2.0

    calibs = np.zeros((B, 3, 4), np.float32)
    trans_inv = np.zeros((B, 2, 3), np.float32)
    for b in range(B):
        fx = 700.0 + 10.0 * b
        calibs[b] = np.array([[fx, 0.0, 640.0, 44.85],
                              [0.0, fx, 192.0, 0.21],
                              [0.0, 0.0, 1.0, 0.0]], np.float32)
        trans_inv[b] = np.array([[1.1, 0.0, 4.0 + b],
                                 [0.0, 1.1, -2.0]], np.float32)

    # ground-truth corners (numpy replica of generate_corners3d) and projections
    cr, sr = np.cos(ry), np.sin(ry)
    a = np.array([0.5, 0.5, -0.5, -0.5])
    bcoef = np.array([0.5, -0.5, -0.5, 0.5])
    w_, l_ = dims[..., 1], dims[..., 2]
    cxo = cr[..., None] * l_[..., None] * a + sr[..., None] * w_[..., None] * bcoef
    czo = -sr[..., None] * l_[..., None] * a + cr[..., None] * w_[..., None] * bcoef
    Qx = np.concatenate([x3d[..., None], x3d[..., None] + cxo], -1)  # (B, K, 5)
    Qz = np.concatenate([z3d[..., None], z3d[..., None] + czo], -1)
    Qy = np.broadcast_to((y3d + h / 2.0)[..., None], Qx.shape)
    Qgt = np.stack([Qx, Qy, Qz], -1).astype(np.float32)              # (B, K, 5, 3)

    Pgt = np.zeros((B, K, 5, 2), np.float32)
    center_3dto2d = np.zeros((B, K, 2), np.float32)
    for b in range(B):
        P2 = calibs[b]
        u = (P2[0, 0] * Qx[b] + P2[0, 2] * Qz[b] + P2[0, 3]) / Qz[b]
        v = (P2[1, 1] * Qy[b] + P2[1, 2] * Qz[b] + P2[1, 3]) / Qz[b]
        Pgt[b] = np.stack([u, v], -1)
        uc = (P2[0, 0] * x3d[b] + P2[0, 2] * z3d[b] + P2[0, 3]) / z3d[b]
        vc = (P2[1, 1] * y3d[b] + P2[1, 2] * z3d[b] + P2[1, 3]) / z3d[b]
        inv = trans_inv[b]
        ui = (uc - inv[0, 2]) / inv[0, 0]
        vi = (vc - inv[1, 2]) / inv[1, 1]
        center_3dto2d[b] = np.stack([ui, vi], -1) / 4.0

    targets = {
        'mask_2d': mask_2d,
        'center_3dto2d': center_3dto2d,
        'cls_ids': cls_ids,
        'ry': ry.reshape(B, K, 1).astype(np.float32),
        'size_3d': size_res.astype(np.float32),
        'Pgt': Pgt,
        'Qgt': Qgt,
        'offset_3d': np.zeros((B, K, 2), np.float32),
        'depth': z3d.reshape(B, K, 1).astype(np.float32),
    }
    n_obj = int(flat_mask.sum())
    outputs = {
        'offset_3d': jnp.asarray(off_noise[flat_mask].astype(np.float32)),
        'depth': jnp.asarray(np.concatenate(
            [z3d.reshape(-1, 1)[flat_mask] + dep_noise[flat_mask],
             np.full((n_obj, 1), -2.0)], axis=1).astype(np.float32)),
    }

    loss_fn = HomographyLossPallas(epoch=1, calibs=calibs,
                                   info={'trans_inv': trans_inv}, logger=None)
    loss = loss_fn(outputs, targets)
    loss = jax.block_until_ready(loss)
    assert loss.shape == () and np.isfinite(float(loss))
    print("KERNEL_OK")
</pallas_src>

<mosaic_0001>
module attributes {stable_mosaic.version = 11 : i64} {
  func.func @_corners_kernel(%arg0: memref<18x8x128xf32, #tpu.memory_space<vmem>>, %arg1: memref<10x8x128xf32, #tpu.memory_space<vmem>>) attributes {dimension_semantics = [], scalar_prefetch = 0 : i64, scratch_operands = 0 : i64, tpu.core_type = #tpu.core_type<tc>} {
    %c0 = arith.constant 0 : index
    %c0_0 = arith.constant 0 : index
    %c0_1 = arith.constant 0 : index
    %0 = vector.load %arg0[%c0, %c0_0, %c0_1] : memref<18x8x128xf32, #tpu.memory_space<vmem>>, vector<1x8x128xf32>
    %1 = vector.shape_cast %0 : vector<1x8x128xf32> to vector<8x128xf32>
    %c2 = arith.constant 2 : index
    %c0_2 = arith.constant 0 : index
    %c0_3 = arith.constant 0 : index
    %2 = vector.load %arg0[%c2, %c0_2, %c0_3] : memref<18x8x128xf32, #tpu.memory_space<vmem>>, vector<1x8x128xf32>
    %3 = vector.shape_cast %2 : vector<1x8x128xf32> to vector<8x128xf32>
    %4 = arith.addf %1, %3 : vector<8x128xf32>
    %cst = arith.constant 4.000000e+00 : f32
    %5 = vector.broadcast %cst : f32 to vector<8x128xf32>
    %6 = arith.mulf %4, %5 : vector<8x128xf32>
    %c1 = arith.constant 1 : index
    %c0_4 = arith.constant 0 : index
    %c0_5 = arith.constant 0 : index
    %7 = vector.load %arg0[%c1, %c0_4, %c0_5] : memref<18x8x128xf32, #tpu.memory_space<vmem>>, vector<1x8x128xf32>
    %8 = vector.shape_cast %7 : vector<1x8x128xf32> to vector<8x128xf32>
    %c3 = arith.constant 3 : index
    %c0_6 = arith.constant 0 : index
    %c0_7 = arith.constant 0 : index
    %9 = vector.load %arg0[%c3, %c0_6, %c0_7] : memref<18x8x128xf32, #tpu.memory_space<vmem>>, vector<1x8x128xf32>
    %10 = vector.shape_cast %9 : vector<1x8x128xf32> to vector<8x128xf32>
    %11 = arith.addf %8, %10 : vector<8x128xf32>
    %cst_8 = arith.constant 4.000000e+00 : f32
    %12 = vector.broadcast %cst_8 : f32 to vector<8x128xf32>
    %13 = arith.mulf %11, %12 : vector<8x128xf32>
    %c4 = arith.constant 4 : index
    %c0_9 = arith.constant 0 : index
    %c0_10 = arith.constant 0 : index
    %14 = vector.load %arg0[%c4, %c0_9, %c0_10] : memref<18x8x128xf32, #tpu.memory_space<vmem>>, vector<1x8x128xf32>
    %15 = vector.shape_cast %14 : vector<1x8x128xf32> to vector<8x128xf32>
    %c5 = arith.constant 5 : index
    %c0_11 = arith.constant 0 : index
    %c0_12 = arith.constant 0 : index
    %16 = vector.load %arg0[%c5, %c0_11, %c0_12] : memref<18x8x128xf32, #tpu.memory_space<vmem>>, vector<1x8x128xf32>
    %17 = vector.shape_cast %16 : vector<1x8x128xf32> to vector<8x128xf32>
    %18 = arith.mulf %17, %6 : vector<8x128xf32>
    %c6 = arith.constant 6 : index
    %c0_13 = arith.constant 0 : index
    %c0_14 = arith.constant 0 : index
    %19 = vector.load %arg0[%c6, %c0_13, %c0_14] : memref<18x8x128xf32, #tpu.memory_space<vmem>>, vector<1x8x128xf32>
    %20 = vector.shape_cast %19 : vector<1x8x128xf32> to vector<8x128xf32>
    %21 = arith.mulf %20, %13 : vector<8x128xf32>
    %22 = arith.addf %18, %21 : vector<8x128xf32>
    %c7 = arith.constant 7 : index
    %c0_15 = arith.constant 0 : index
    %c0_16 = arith.constant 0 : index
    %23 = vector.load %arg0[%c7, %c0_15, %c0_16] : memref<18x8x128xf32, #tpu.memory_space<vmem>>, vector<1x8x128xf32>
    %24 = vector.shape_cast %23 : vector<1x8x128xf32> to vector<8x128xf32>
    %25 = arith.addf %22, %24 : vector<8x128xf32>
    %c11 = arith.constant 11 : index
    %c0_17 = arith.constant 0 : index
    %c0_18 = arith.constant 0 : index
    %26 = vector.load %arg0[%c11, %c0_17, %c0_18] : memref<18x8x128xf32, #tpu.memory_space<vmem>>, vector<1x8x128xf32>
    %27 = vector.shape_cast %26 : vector<1x8x128xf32> to vector<8x128xf32>
    %c12 = arith.constant 12 : index
    %c0_19 = arith.constant 0 : index
    %c0_20 = arith.constant 0 : index
    %28 = vector.load %arg0[%c12, %c0_19, %c0_20] : memref<18x8x128xf32, #tpu.memory_space<vmem>>, vector<1x8x128xf32>
    %29 = vector.shape_cast %28 : vector<1x8x128xf32> to vector<8x128xf32>
    %c13 = arith.constant 13 : index
    %c0_21 = arith.constant 0 : index
    %c0_22 = arith.constant 0 : index
    %30 = vector.load %arg0[%c13, %c0_21, %c0_22] : memref<18x8x128xf32, #tpu.memory_space<vmem>>, vector<1x8x128xf32>
    %31 = vector.shape_cast %30 : vector<1x8x128xf32> to vector<8x128xf32>
    %cst_23 = arith.constant 1.000000e+00 : f32
    %32 = vector.broadcast %cst_23 : f32 to vector<8x128xf32>
    %33 = arith.divf %32, %27 : vector<8x128xf32>
    %34 = arith.subf %25, %29 : vector<8x128xf32>
    %35 = arith.mulf %34, %15 : vector<8x128xf32>
    %36 = arith.mulf %35, %33 : vector<8x128xf32>
    %37 = arith.mulf %31, %33 : vector<8x128xf32>
    %38 = arith.subf %36, %37 : vector<8x128xf32>
    %c17 = arith.constant 17 : index
    %c0_24 = arith.constant 0 : index
    %c0_25 = arith.constant 0 : index
    %39 = vector.load %arg0[%c17, %c0_24, %c0_25] : memref<18x8x128xf32, #tpu.memory_space<vmem>>, vector<1x8x128xf32>
    %40 = vector.shape_cast %39 : vector<1x8x128xf32> to vector<8x128xf32>
    %cst_26 = arith.constant 5.000000e-01 : f32
    %41 = vector.broadcast %cst_26 : f32 to vector<8x128xf32>
    %42 = arith.cmpf olt, %40, %41 : vector<8x128xf32>
    %cst_27 = arith.constant 1.500000e+00 : f32
    %43 = vector.broadcast %cst_27 : f32 to vector<8x128xf32>
    %44 = arith.cmpf olt, %40, %43 : vector<8x128xf32>
    %cst_28 = arith.constant 1.62856746 : f32
    %cst_29 = arith.constant 0.597063661 : f32
    %45 = vector.broadcast %cst_28 : f32 to vector<8x128xf32>
    %46 = vector.broadcast %cst_29 : f32 to vector<8x128xf32>
    %47 = arith.select %44, %45, %46 : vector<8x128xi1>, vector<8x128xf32>
    %cst_30 = arith.constant 0.660686194 : f32
    %48 = vector.broadcast %cst_30 : f32 to vector<8x128xf32>
    %49 = arith.select %42, %48, %47 : vector<8x128xi1>, vector<8x128xf32>
    %cst_31 = arith.constant 5.000000e-01 : f32
    %50 = vector.broadcast %cst_31 : f32 to vector<8x128xf32>
    %51 = arith.cmpf olt, %40, %50 : vector<8x128xf32>
    %cst_32 = arith.constant 1.500000e+00 : f32
    %52 = vector.broadcast %cst_32 : f32 to vector<8x128xf32>
    %53 = arith.cmpf olt, %40, %52 : vector<8x128xf32>
    %cst_33 = arith.constant 3.88311648 : f32
    %cst_34 = arith.constant 1.76282394 : f32
    %54 = vector.broadcast %cst_33 : f32 to vector<8x128xf32>
    %55 = vector.broadcast %cst_34 : f32 to vector<8x128xf32>
    %56 = arith.select %53, %54, %55 : vector<8x128xi1>, vector<8x128xf32>
    %cst_35 = arith.constant 0.844225227 : f32
    %57 = vector.broadcast %cst_35 : f32 to vector<8x128xf32>
    %58 = arith.select %51, %57, %56 : vector<8x128xi1>, vector<8x128xf32>
    %c14 = arith.constant 14 : index
    %c0_36 = arith.constant 0 : index
    %c0_37 = arith.constant 0 : index
    %59 = vector.load %arg0[%c14, %c0_36, %c0_37] : memref<18x8x128xf32, #tpu.memory_space<vmem>>, vector<1x8x128xf32>
    %60 = vector.shape_cast %59 : vector<1x8x128xf32> to vector<8x128xf32>
    %61 = arith.addf %60, %49 : vector<8x128xf32>
    %cst_38 = arith.constant 5.000000e-01 : f32
    %62 = vector.broadcast %cst_38 : f32 to vector<8x128xf32>
    %63 = arith.mulf %62, %61 : vector<8x128xf32>
    %c15 = arith.constant 15 : index
    %c0_39 = arith.constant 0 : index
    %c0_40 = arith.constant 0 : index
    %64 = vector.load %arg0[%c15, %c0_39, %c0_40] : memref<18x8x128xf32, #tpu.memory_space<vmem>>, vector<1x8x128xf32>
    %65 = vector.shape_cast %64 : vector<1x8x128xf32> to vector<8x128xf32>
    %66 = arith.addf %65, %58 : vector<8x128xf32>
    %cst_41 = arith.constant 5.000000e-01 : f32
    %67 = vector.broadcast %cst_41 : f32 to vector<8x128xf32>
    %68 = arith.mulf %67, %66 : vector<8x128xf32>
    %c16 = arith.constant 16 : index
    %c0_42 = arith.constant 0 : index
    %c0_43 = arith.constant 0 : index
    %69 = vector.load %arg0[%c16, %c0_42, %c0_43] : memref<18x8x128xf32, #tpu.memory_space<vmem>>, vector<1x8x128xf32>
    %70 = vector.shape_cast %69 : vector<1x8x128xf32> to vector<8x128xf32>
    %71 = math.cos %70 : vector<8x128xf32>
    %72 = math.sin %70 : vector<8x128xf32>
    %73 = arith.mulf %71, %68 : vector<8x128xf32>
    %74 = arith.mulf %72, %68 : vector<8x128xf32>
    %75 = arith.mulf %71, %63 : vector<8x128xf32>
    %76 = arith.mulf %72, %63 : vector<8x128xf32>
    %c0_44 = arith.constant 0 : index
    %c0_45 = arith.constant 0 : index
    %c0_46 = arith.constant 0 : index
    %77 = vector.load %arg1[%c0_44, %c0_45, %c0_46] : memref<10x8x128xf32, #tpu.memory_space<vmem>>, vector<1x8x128xf32>
    %78 = vector.shape_cast %77 : vector<1x8x128xf32> to vector<8x128xf32>
    %79 = vector.shape_cast %38 : vector<8x128xf32> to vector<1x8x128xf32>
    tpu.vector_store %arg1[%c0_44, %c0_45, %c0_46], %79 {strides = array<i32>} : memref<10x8x128xf32, #tpu.memory_space<vmem>>, vector<1x8x128xf32>,
    %80 = arith.addf %38, %73 : vector<8x128xf32>
    %81 = arith.addf %80, %76 : vector<8x128xf32>
    %c1_47 = arith.constant 1 : index
    %c0_48 = arith.constant 0 : index
    %c0_49 = arith.constant 0 : index
    %82 = vector.load %arg1[%c1_47, %c0_48, %c0_49] : memref<10x8x128xf32, #tpu.memory_space<vmem>>, vector<1x8x128xf32>
    %83 = vector.shape_cast %82 : vector<1x8x128xf32> to vector<8x128xf32>
    %84 = vector.shape_cast %81 : vector<8x128xf32> to vector<1x8x128xf32>
    tpu.vector_store %arg1[%c1_47, %c0_48, %c0_49], %84 {strides = array<i32>} : memref<10x8x128xf32, #tpu.memory_space<vmem>>, vector<1x8x128xf32>,
    %85 = arith.addf %38, %73 : vector<8x128xf32>
    %86 = arith.subf %85, %76 : vector<8x128xf32>
    %c2_50 = arith.constant 2 : index
    %c0_51 = arith.constant 0 : index
    %c0_52 = arith.constant 0 : index
    %87 = vector.load %arg1[%c2_50, %c0_51, %c0_52] : memref<10x8x128xf32, #tpu.memory_space<vmem>>, vector<1x8x128xf32>
    %88 = vector.shape_cast %87 : vector<1x8x128xf32> to vector<8x128xf32>
    %89 = vector.shape_cast %86 : vector<8x128xf32> to vector<1x8x128xf32>
    tpu.vector_store %arg1[%c2_50, %c0_51, %c0_52], %89 {strides = array<i32>} : memref<10x8x128xf32, #tpu.memory_space<vmem>>, vector<1x8x128xf32>,
    %90 = arith.subf %38, %73 : vector<8x128xf32>
    %91 = arith.subf %90, %76 : vector<8x128xf32>
    %c3_53 = arith.constant 3 : index
    %c0_54 = arith.constant 0 : index
    %c0_55 = arith.constant 0 : index
    %92 = vector.load %arg1[%c3_53, %c0_54, %c0_55] : memref<10x8x128xf32, #tpu.memory_space<vmem>>, vector<1x8x128xf32>
    %93 = vector.shape_cast %92 : vector<1x8x128xf32> to vector<8x128xf32>
    %94 = vector.shape_cast %91 : vector<8x128xf32> to vector<1x8x128xf32>
    tpu.vector_store %arg1[%c3_53, %c0_54, %c0_55], %94 {strides = array<i32>} : memref<10x8x128xf32, #tpu.memory_space<vmem>>, vector<1x8x128xf32>,
    %95 = arith.subf %38, %73 : vector<8x128xf32>
    %96 = arith.addf %95, %76 : vector<8x128xf32>
    %c4_56 = arith.constant 4 : index
    %c0_57 = arith.constant 0 : index
    %c0_58 = arith.constant 0 : index
    %97 = vector.load %arg1[%c4_56, %c0_57, %c0_58] : memref<10x8x128xf32, #tpu.memory_space<vmem>>, vector<1x8x128xf32>
    %98 = vector.shape_cast %97 : vector<1x8x128xf32> to vector<8x128xf32>
    %99 = vector.shape_cast %96 : vector<8x128xf32> to vector<1x8x128xf32>
    tpu.vector_store %arg1[%c4_56, %c0_57, %c0_58], %99 {strides = array<i32>} : memref<10x8x128xf32, #tpu.memory_space<vmem>>, vector<1x8x128xf32>,
    %c5_59 = arith.constant 5 : index
    %c0_60 = arith.constant 0 : index
    %c0_61 = arith.constant 0 : index
    %100 = vector.load %arg1[%c5_59, %c0_60, %c0_61] : memref<10x8x128xf32, #tpu.memory_space<vmem>>, vector<1x8x128xf32>
    %101 = vector.shape_cast %100 : vector<1x8x128xf32> to vector<8x128xf32>
    %102 = vector.shape_cast %15 : vector<8x128xf32> to vector<1x8x128xf32>
    tpu.vector_store %arg1[%c5_59, %c0_60, %c0_61], %102 {strides = array<i32>} : memref<10x8x128xf32, #tpu.memory_space<vmem>>, vector<1x8x128xf32>,
    %103 = arith.subf %15, %74 : vector<8x128xf32>
    %104 = arith.addf %103, %75 : vector<8x128xf32>
    %c6_62 = arith.constant 6 : index
    %c0_63 = arith.constant 0 : index
    %c0_64 = arith.constant 0 : index
    %105 = vector.load %arg1[%c6_62, %c0_63, %c0_64] : memref<10x8x128xf32, #tpu.memory_space<vmem>>, vector<1x8x128xf32>
    %106 = vector.shape_cast %105 : vector<1x8x128xf32> to vector<8x128xf32>
    %107 = vector.shape_cast %104 : vector<8x128xf32> to vector<1x8x128xf32>
    tpu.vector_store %arg1[%c6_62, %c0_63, %c0_64], %107 {strides = array<i32>} : memref<10x8x128xf32, #tpu.memory_space<vmem>>, vector<1x8x128xf32>,
    %108 = arith.subf %15, %74 : vector<8x128xf32>
    %109 = arith.subf %108, %75 : vector<8x128xf32>
    %c7_65 = arith.constant 7 : index
    %c0_66 = arith.constant 0 : index
    %c0_67 = arith.constant 0 : index
    %110 = vector.load %arg1[%c7_65, %c0_66, %c0_67] : memref<10x8x128xf32, #tpu.memory_space<vmem>>, vector<1x8x128xf32>
    %111 = vector.shape_cast %110 : vector<1x8x128xf32> to vector<8x128xf32>
    %112 = vector.shape_cast %109 : vector<8x128xf32> to vector<1x8x128xf32>
    tpu.vector_store %arg1[%c7_65, %c0_66, %c0_67], %112 {strides = array<i32>} : memref<10x8x128xf32, #tpu.memory_space<vmem>>, vector<1x8x128xf32>,
    %113 = arith.addf %15, %74 : vector<8x128xf32>
    %114 = arith.subf %113, %75 : vector<8x128xf32>
    %c8 = arith.constant 8 : index
    %c0_68 = arith.constant 0 : index
    %c0_69 = arith.constant 0 : index
    %115 = vector.load %arg1[%c8, %c0_68, %c0_69] : memref<10x8x128xf32, #tpu.memory_space<vmem>>, vector<1x8x128xf32>
    %116 = vector.shape_cast %115 : vector<1x8x128xf32> to vector<8x128xf32>
    %117 = vector.shape_cast %114 : vector<8x128xf32> to vector<1x8x128xf32>
    tpu.vector_store %arg1[%c8, %c0_68, %c0_69], %117 {strides = array<i32>} : memref<10x8x128xf32, #tpu.memory_space<vmem>>, vector<1x8x128xf32>,
    %118 = arith.addf %15, %74 : vector<8x128xf32>
    %119 = arith.addf %118, %75 : vector<8x128xf32>
    %c9 = arith.constant 9 : index
    %c0_70 = arith.constant 0 : index
    %c0_71 = arith.constant 0 : index
    %120 = vector.load %arg1[%c9, %c0_70, %c0_71] : memref<10x8x128xf32, #tpu.memory_space<vmem>>, vector<1x8x128xf32>
    %121 = vector.shape_cast %120 : vector<1x8x128xf32> to vector<8x128xf32>
    %122 = vector.shape_cast %119 : vector<8x128xf32> to vector<1x8x128xf32>
    tpu.vector_store %arg1[%c9, %c0_70, %c0_71], %122 {strides = array<i32>} : memref<10x8x128xf32, #tpu.memory_space<vmem>>, vector<1x8x128xf32>,
    return
  }
}

module attributes {stable_mosaic.version = 11 : i64} {
  func.func @_reproj_loss_kernel(%arg0: memref<32x8x128xf32, #tpu.memory_space<vmem>>, %arg1: memref<8x128xf32, #tpu.memory_space<vmem>>) attributes {dimension_semantics = [], scalar_prefetch = 0 : i64, scratch_operands = 0 : i64, tpu.core_type = #tpu.core_type<tc>} {
    %c0 = arith.constant 0 : index
    %c0_0 = arith.constant 0 : index
    %c0_1 = arith.constant 0 : index
    %0 = vector.load %arg0[%c0, %c0_0, %c0_1] : memref<32x8x128xf32, #tpu.memory_space<vmem>>, vector<1x8x128xf32>
    %1 = vector.shape_cast %0 : vector<1x8x128xf32> to vector<8x128xf32>
    %c1 = arith.constant 1 : index
    %c0_2 = arith.constant 0 : index
    %c0_3 = arith.constant 0 : index
    %2 = vector.load %arg0[%c1, %c0_2, %c0_3] : memref<32x8x128xf32, #tpu.memory_space<vmem>>, vector<1x8x128xf32>
    %3 = vector.shape_cast %2 : vector<1x8x128xf32> to vector<8x128xf32>
    %c2 = arith.constant 2 : index
    %c0_4 = arith.constant 0 : index
    %c0_5 = arith.constant 0 : index
    %4 = vector.load %arg0[%c2, %c0_4, %c0_5] : memref<32x8x128xf32, #tpu.memory_space<vmem>>, vector<1x8x128xf32>
    %5 = vector.shape_cast %4 : vector<1x8x128xf32> to vector<8x128xf32>
    %c3 = arith.constant 3 : index
    %c0_6 = arith.constant 0 : index
    %c0_7 = arith.constant 0 : index
    %6 = vector.load %arg0[%c3, %c0_6, %c0_7] : memref<32x8x128xf32, #tpu.memory_space<vmem>>, vector<1x8x128xf32>
    %7 = vector.shape_cast %6 : vector<1x8x128xf32> to vector<8x128xf32>
    %c4 = arith.constant 4 : index
    %c0_8 = arith.constant 0 : index
    %c0_9 = arith.constant 0 : index
    %8 = vector.load %arg0[%c4, %c0_8, %c0_9] : memref<32x8x128xf32, #tpu.memory_space<vmem>>, vector<1x8x128xf32>
    %9 = vector.shape_cast %8 : vector<1x8x128xf32> to vector<8x128xf32>
    %cst = arith.constant 5.000000e-01 : f32
    %10 = vector.broadcast %cst : f32 to vector<8x128xf32>
    %11 = arith.cmpf ogt, %9, %10 : vector<8x128xf32>
    %c5 = arith.constant 5 : index
    %c0_10 = arith.constant 0 : index
    %c0_11 = arith.constant 0 : index
    %12 = vector.load %arg0[%c5, %c0_10, %c0_11] : memref<32x8x128xf32, #tpu.memory_space<vmem>>, vector<1x8x128xf32>
    %13 = vector.shape_cast %12 : vector<1x8x128xf32> to vector<8x128xf32>
    %14 = arith.mulf %1, %13 : vector<8x128xf32>
    %c6 = arith.constant 6 : index
    %c0_12 = arith.constant 0 : index
    %c0_13 = arith.constant 0 : index
    %15 = vector.load %arg0[%c6, %c0_12, %c0_13] : memref<32x8x128xf32, #tpu.memory_space<vmem>>, vector<1x8x128xf32>
    %16 = vector.shape_cast %15 : vector<1x8x128xf32> to vector<8x128xf32>
    %17 = arith.mulf %3, %16 : vector<8x128xf32>
    %18 = arith.addf %14, %17 : vector<8x128xf32>
    %c7 = arith.constant 7 : index
    %c0_14 = arith.constant 0 : index
    %c0_15 = arith.constant 0 : index
    %19 = vector.load %arg0[%c7, %c0_14, %c0_15] : memref<32x8x128xf32, #tpu.memory_space<vmem>>, vector<1x8x128xf32>
    %20 = vector.shape_cast %19 : vector<1x8x128xf32> to vector<8x128xf32>
    %21 = arith.addf %18, %20 : vector<8x128xf32>
    %c8 = arith.constant 8 : index
    %c0_16 = arith.constant 0 : index
    %c0_17 = arith.constant 0 : index
    %22 = vector.load %arg0[%c8, %c0_16, %c0_17] : memref<32x8x128xf32, #tpu.memory_space<vmem>>, vector<1x8x128xf32>
    %23 = vector.shape_cast %22 : vector<1x8x128xf32> to vector<8x128xf32>
    %24 = arith.mulf %1, %23 : vector<8x128xf32>
    %c9 = arith.constant 9 : index
    %c0_18 = arith.constant 0 : index
    %c0_19 = arith.constant 0 : index
    %25 = vector.load %arg0[%c9, %c0_18, %c0_19] : memref<32x8x128xf32, #tpu.memory_space<vmem>>, vector<1x8x128xf32>
    %26 = vector.shape_cast %25 : vector<1x8x128xf32> to vector<8x128xf32>
    %27 = arith.mulf %3, %26 : vector<8x128xf32>
    %28 = arith.addf %24, %27 : vector<8x128xf32>
    %c10 = arith.constant 10 : index
    %c0_20 = arith.constant 0 : index
    %c0_21 = arith.constant 0 : index
    %29 = vector.load %arg0[%c10, %c0_20, %c0_21] : memref<32x8x128xf32, #tpu.memory_space<vmem>>, vector<1x8x128xf32>
    %30 = vector.shape_cast %29 : vector<1x8x128xf32> to vector<8x128xf32>
    %31 = arith.addf %28, %30 : vector<8x128xf32>
    %c11 = arith.constant 11 : index
    %c0_22 = arith.constant 0 : index
    %c0_23 = arith.constant 0 : index
    %32 = vector.load %arg0[%c11, %c0_22, %c0_23] : memref<32x8x128xf32, #tpu.memory_space<vmem>>, vector<1x8x128xf32>
    %33 = vector.shape_cast %32 : vector<1x8x128xf32> to vector<8x128xf32>
    %34 = arith.mulf %1, %33 : vector<8x128xf32>
    %c12 = arith.constant 12 : index
    %c0_24 = arith.constant 0 : index
    %c0_25 = arith.constant 0 : index
    %35 = vector.load %arg0[%c12, %c0_24, %c0_25] : memref<32x8x128xf32, #tpu.memory_space<vmem>>, vector<1x8x128xf32>
    %36 = vector.shape_cast %35 : vector<1x8x128xf32> to vector<8x128xf32>
    %37 = arith.mulf %3, %36 : vector<8x128xf32>
    %38 = arith.addf %34, %37 : vector<8x128xf32>
    %c13 = arith.constant 13 : index
    %c0_26 = arith.constant 0 : index
    %c0_27 = arith.constant 0 : index
    %39 = vector.load %arg0[%c13, %c0_26, %c0_27] : memref<32x8x128xf32, #tpu.memory_space<vmem>>, vector<1x8x128xf32>
    %40 = vector.shape_cast %39 : vector<1x8x128xf32> to vector<8x128xf32>
    %41 = arith.addf %38, %40 : vector<8x128xf32>
    %cst_28 = arith.constant 1.000000e-10 : f32
    %42 = vector.broadcast %cst_28 : f32 to vector<8x128xf32>
    %43 = arith.addf %41, %42 : vector<8x128xf32>
    %cst_29 = arith.constant 1.000000e+00 : f32
    %44 = vector.broadcast %cst_29 : f32 to vector<8x128xf32>
    %45 = arith.divf %44, %43 : vector<8x128xf32>
    %46 = arith.mulf %21, %45 : vector<8x128xf32>
    %47 = arith.mulf %31, %45 : vector<8x128xf32>
    %cst_30 = arith.constant -4.500000e+01 : f32
    %48 = vector.broadcast %cst_30 : f32 to vector<8x128xf32>
    %49 = arith.cmpf ogt, %46, %48 : vector<8x128xf32>
    %cst_31 = arith.constant 4.500000e+01 : f32
    %50 = vector.broadcast %cst_31 : f32 to vector<8x128xf32>
    %51 = arith.cmpf olt, %46, %50 : vector<8x128xf32>
    %52 = arith.andi %49, %51 : vector<8x128xi1>
    %cst_32 = arith.constant 0.000000e+00 : f32
    %53 = vector.broadcast %cst_32 : f32 to vector<8x128xf32>
    %54 = arith.cmpf ogt, %47, %53 : vector<8x128xf32>
    %55 = arith.andi %52, %54 : vector<8x128xi1>
    %cst_33 = arith.constant 8.000000e+01 : f32
    %56 = vector.broadcast %cst_33 : f32 to vector<8x128xf32>
    %57 = arith.cmpf olt, %47, %56 : vector<8x128xf32>
    %58 = arith.andi %55, %57 : vector<8x128xi1>
    %59 = arith.andi %58, %11 : vector<8x128xi1>
    %60 = arith.subf %46, %5 : vector<8x128xf32>
    %61 = arith.subf %47, %7 : vector<8x128xf32>
    %62 = math.absf %60 : vector<8x128xf32>
    %63 = math.absf %61 : vector<8x128xf32>
    %cst_34 = arith.constant 1.000000e+00 : f32
    %64 = vector.broadcast %cst_34 : f32 to vector<8x128xf32>
    %65 = arith.cmpf olt, %62, %64 : vector<8x128xf32>
    %cst_35 = arith.constant 5.000000e-01 : f32
    %66 = vector.broadcast %cst_35 : f32 to vector<8x128xf32>
    %67 = arith.mulf %66, %60 : vector<8x128xf32>
    %68 = arith.mulf %67, %60 : vector<8x128xf32>
    %cst_36 = arith.constant 5.000000e-01 : f32
    %69 = vector.broadcast %cst_36 : f32 to vector<8x128xf32>
    %70 = arith.subf %62, %69 : vector<8x128xf32>
    %71 = arith.select %65, %68, %70 : vector<8x128xi1>, vector<8x128xf32>
    %cst_37 = arith.constant 1.000000e+00 : f32
    %72 = vector.broadcast %cst_37 : f32 to vector<8x128xf32>
    %73 = arith.cmpf olt, %63, %72 : vector<8x128xf32>
    %cst_38 = arith.constant 5.000000e-01 : f32
    %74 = vector.broadcast %cst_38 : f32 to vector<8x128xf32>
    %75 = arith.mulf %74, %61 : vector<8x128xf32>
    %76 = arith.mulf %75, %61 : vector<8x128xf32>
    %cst_39 = arith.constant 5.000000e-01 : f32
    %77 = vector.broadcast %cst_39 : f32 to vector<8x128xf32>
    %78 = arith.subf %63, %77 : vector<8x128xf32>
    %79 = arith.select %73, %76, %78 : vector<8x128xi1>, vector<8x128xf32>
    %80 = arith.addf %71, %79 : vector<8x128xf32>
    %cst_40 = arith.constant 0.000000e+00 : f32
    %81 = vector.broadcast %cst_40 : f32 to vector<8x128xf32>
    %82 = arith.select %59, %80, %81 : vector<8x128xi1>, vector<8x128xf32>
    %cst_41 = arith.constant dense<0.000000e+00> : vector<128xf32>
    %83 = vector.multi_reduction <add>, %82, %cst_41 [0] : vector<8x128xf32> to vector<128xf32>
    %84 = vector.shape_cast %83 : vector<128xf32> to vector<1x128xf32>
    %cst_42 = arith.constant 1.000000e+00 : f32
    %cst_43 = arith.constant 0.000000e+00 : f32
    %85 = vector.broadcast %cst_42 : f32 to vector<8x128xf32>
    %86 = vector.broadcast %cst_43 : f32 to vector<8x128xf32>
    %87 = arith.select %59, %85, %86 : vector<8x128xi1>, vector<8x128xf32>
    %cst_44 = arith.constant dense<0.000000e+00> : vector<128xf32>
    %88 = vector.multi_reduction <add>, %87, %cst_44 [0] : vector<8x128xf32> to vector<128xf32>
    %89 = vector.shape_cast %88 : vector<128xf32> to vector<1x128xf32>
    %c14 = arith.constant 14 : index
    %c0_45 = arith.constant 0 : index
    %c0_46 = arith.constant 0 : index
    %90 = vector.load %arg0[%c14, %c0_45, %c0_46] : memref<32x8x128xf32, #tpu.memory_space<vmem>>, vector<1x8x128xf32>
    %91 = vector.shape_cast %90 : vector<1x8x128xf32> to vector<8x128xf32>
    %92 = arith.mulf %1, %91 : vector<8x128xf32>
    %c15 = arith.constant 15 : index
    %c0_47 = arith.constant 0 : index
    %c0_48 = arith.constant 0 : index
    %93 = vector.load %arg0[%c15, %c0_47, %c0_48] : memref<32x8x128xf32, #tpu.memory_space<vmem>>, vector<1x8x128xf32>
    %94 = vector.shape_cast %93 : vector<1x8x128xf32> to vector<8x128xf32>
    %95 = arith.mulf %3, %94 : vector<8x128xf32>
    %96 = arith.addf %92, %95 : vector<8x128xf32>
    %c16 = arith.constant 16 : index
    %c0_49 = arith.constant 0 : index
    %c0_50 = arith.constant 0 : index
    %97 = vector.load %arg0[%c16, %c0_49, %c0_50] : memref<32x8x128xf32, #tpu.memory_space<vmem>>, vector<1x8x128xf32>
    %98 = vector.shape_cast %97 : vector<1x8x128xf32> to vector<8x128xf32>
    %99 = arith.addf %96, %98 : vector<8x128xf32>
    %c17 = arith.constant 17 : index
    %c0_51 = arith.constant 0 : index
    %c0_52 = arith.constant 0 : index
    %100 = vector.load %arg0[%c17, %c0_51, %c0_52] : memref<32x8x128xf32, #tpu.memory_space<vmem>>, vector<1x8x128xf32>
    %101 = vector.shape_cast %100 : vector<1x8x128xf32> to vector<8x128xf32>
    %102 = arith.mulf %1, %101 : vector<8x128xf32>
    %c18 = arith.constant 18 : index
    %c0_53 = arith.constant 0 : index
    %c0_54 = arith.constant 0 : index
    %103 = vector.load %arg0[%c18, %c0_53, %c0_54] : memref<32x8x128xf32, #tpu.memory_space<vmem>>, vector<1x8x128xf32>
    %104 = vector.shape_cast %103 : vector<1x8x128xf32> to vector<8x128xf32>
    %105 = arith.mulf %3, %104 : vector<8x128xf32>
    %106 = arith.addf %102, %105 : vector<8x128xf32>
    %c19 = arith.constant 19 : index
    %c0_55 = arith.constant 0 : index
    %c0_56 = arith.constant 0 : index
    %107 = vector.load %arg0[%c19, %c0_55, %c0_56] : memref<32x8x128xf32, #tpu.memory_space<vmem>>, vector<1x8x128xf32>
    %108 = vector.shape_cast %107 : vector<1x8x128xf32> to vector<8x128xf32>
    %109 = arith.addf %106, %108 : vector<8x128xf32>
    %c20 = arith.constant 20 : index
    %c0_57 = arith.constant 0 : index
    %c0_58 = arith.constant 0 : index
    %110 = vector.load %arg0[%c20, %c0_57, %c0_58] : memref<32x8x128xf32, #tpu.memory_space<vmem>>, vector<1x8x128xf32>
    %111 = vector.shape_cast %110 : vector<1x8x128xf32> to vector<8x128xf32>
    %112 = arith.mulf %1, %111 : vector<8x128xf32>
    %c21 = arith.constant 21 : index
    %c0_59 = arith.constant 0 : index
    %c0_60 = arith.constant 0 : index
    %113 = vector.load %arg0[%c21, %c0_59, %c0_60] : memref<32x8x128xf32, #tpu.memory_space<vmem>>, vector<1x8x128xf32>
    %114 = vector.shape_cast %113 : vector<1x8x128xf32> to vector<8x128xf32>
    %115 = arith.mulf %3, %114 : vector<8x128xf32>
    %116 = arith.addf %112, %115 : vector<8x128xf32>
    %c22 = arith.constant 22 : index
    %c0_61 = arith.constant 0 : index
    %c0_62 = arith.constant 0 : index
    %117 = vector.load %arg0[%c22, %c0_61, %c0_62] : memref<32x8x128xf32, #tpu.memory_space<vmem>>, vector<1x8x128xf32>
    %118 = vector.shape_cast %117 : vector<1x8x128xf32> to vector<8x128xf32>
    %119 = arith.addf %116, %118 : vector<8x128xf32>
    %cst_63 = arith.constant 1.000000e-10 : f32
    %120 = vector.broadcast %cst_63 : f32 to vector<8x128xf32>
    %121 = arith.addf %119, %120 : vector<8x128xf32>
    %cst_64 = arith.constant 1.000000e+00 : f32
    %122 = vector.broadcast %cst_64 : f32 to vector<8x128xf32>
    %123 = arith.divf %122, %121 : vector<8x128xf32>
    %124 = arith.mulf %99, %123 : vector<8x128xf32>
    %125 = arith.mulf %109, %123 : vector<8x128xf32>
    %cst_65 = arith.constant -4.500000e+01 : f32
    %126 = vector.broadcast %cst_65 : f32 to vector<8x128xf32>
    %127 = arith.cmpf ogt, %124, %126 : vector<8x128xf32>
    %cst_66 = arith.constant 4.500000e+01 : f32
    %128 = vector.broadcast %cst_66 : f32 to vector<8x128xf32>
    %129 = arith.cmpf olt, %124, %128 : vector<8x128xf32>
    %130 = arith.andi %127, %129 : vector<8x128xi1>
    %cst_67 = arith.constant 0.000000e+00 : f32
    %131 = vector.broadcast %cst_67 : f32 to vector<8x128xf32>
    %132 = arith.cmpf ogt, %125, %131 : vector<8x128xf32>
    %133 = arith.andi %130, %132 : vector<8x128xi1>
    %cst_68 = arith.constant 8.000000e+01 : f32
    %134 = vector.broadcast %cst_68 : f32 to vector<8x128xf32>
    %135 = arith.cmpf olt, %125, %134 : vector<8x128xf32>
    %136 = arith.andi %133, %135 : vector<8x128xi1>
    %137 = arith.andi %136, %11 : vector<8x128xi1>
    %138 = arith.subf %124, %5 : vector<8x128xf32>
    %139 = arith.subf %125, %7 : vector<8x128xf32>
    %140 = math.absf %138 : vector<8x128xf32>
    %141 = math.absf %139 : vector<8x128xf32>
    %cst_69 = arith.constant 1.000000e+00 : f32
    %142 = vector.broadcast %cst_69 : f32 to vector<8x128xf32>
    %143 = arith.cmpf olt, %140, %142 : vector<8x128xf32>
    %cst_70 = arith.constant 5.000000e-01 : f32
    %144 = vector.broadcast %cst_70 : f32 to vector<8x128xf32>
    %145 = arith.mulf %144, %138 : vector<8x128xf32>
    %146 = arith.mulf %145, %138 : vector<8x128xf32>
    %cst_71 = arith.constant 5.000000e-01 : f32
    %147 = vector.broadcast %cst_71 : f32 to vector<8x128xf32>
    %148 = arith.subf %140, %147 : vector<8x128xf32>
    %149 = arith.select %143, %146, %148 : vector<8x128xi1>, vector<8x128xf32>
    %cst_72 = arith.constant 1.000000e+00 : f32
    %150 = vector.broadcast %cst_72 : f32 to vector<8x128xf32>
    %151 = arith.cmpf olt, %141, %150 : vector<8x128xf32>
    %cst_73 = arith.constant 5.000000e-01 : f32
    %152 = vector.broadcast %cst_73 : f32 to vector<8x128xf32>
    %153 = arith.mulf %152, %139 : vector<8x128xf32>
    %154 = arith.mulf %153, %139 : vector<8x128xf32>
    %cst_74 = arith.constant 5.000000e-01 : f32
    %155 = vector.broadcast %cst_74 : f32 to vector<8x128xf32>
    %156 = arith.subf %141, %155 : vector<8x128xf32>
    %157 = arith.select %151, %154, %156 : vector<8x128xi1>, vector<8x128xf32>
    %158 = arith.addf %149, %157 : vector<8x128xf32>
    %cst_75 = arith.constant 0.000000e+00 : f32
    %159 = vector.broadcast %cst_75 : f32 to vector<8x128xf32>
    %160 = arith.select %137, %158, %159 : vector<8x128xi1>, vector<8x128xf32>
    %cst_76 = arith.constant dense<0.000000e+00> : vector<128xf32>
    %161 = vector.multi_reduction <add>, %160, %cst_76 [0] : vector<8x128xf32> to vector<128xf32>
    %162 = vector.shape_cast %161 : vector<128xf32> to vector<1x128xf32>
    %cst_77 = arith.constant 1.000000e+00 : f32
    %cst_78 = arith.constant 0.000000e+00 : f32
    %163 = vector.broadcast %cst_77 : f32 to vector<8x128xf32>
    %164 = vector.broadcast %cst_78 : f32 to vector<8x128xf32>
    %165 = arith.select %137, %163, %164 : vector<8x128xi1>, vector<8x128xf32>
    %cst_79 = arith.constant dense<0.000000e+00> : vector<128xf32>
    %166 = vector.multi_reduction <add>, %165, %cst_79 [0] : vector<8x128xf32> to vector<128xf32>
    %167 = vector.shape_cast %166 : vector<128xf32> to vector<1x128xf32>
    %c23 = arith.constant 23 : index
    %c0_80 = arith.constant 0 : index
    %c0_81 = arith.constant 0 : index
    %168 = vector.load %arg0[%c23, %c0_80, %c0_81] : memref<32x8x128xf32, #tpu.memory_space<vmem>>, vector<1x8x128xf32>
    %169 = vector.shape_cast %168 : vector<1x8x128xf32> to vector<8x128xf32>
    %170 = arith.mulf %1, %169 : vector<8x128xf32>
    %c24 = arith.constant 24 : index
    %c0_82 = arith.constant 0 : index
    %c0_83 = arith.constant 0 : index
    %171 = vector.load %arg0[%c24, %c0_82, %c0_83] : memref<32x8x128xf32, #tpu.memory_space<vmem>>, vector<1x8x128xf32>
    %172 = vector.shape_cast %171 : vector<1x8x128xf32> to vector<8x128xf32>
    %173 = arith.mulf %3, %172 : vector<8x128xf32>
    %174 = arith.addf %170, %173 : vector<8x128xf32>
    %c25 = arith.constant 25 : index
    %c0_84 = arith.constant 0 : index
    %c0_85 = arith.constant 0 : index
    %175 = vector.load %arg0[%c25, %c0_84, %c0_85] : memref<32x8x128xf32, #tpu.memory_space<vmem>>, vector<1x8x128xf32>
    %176 = vector.shape_cast %175 : vector<1x8x128xf32> to vector<8x128xf32>
    %177 = arith.addf %174, %176 : vector<8x128xf32>
    %c26 = arith.constant 26 : index
    %c0_86 = arith.constant 0 : index
    %c0_87 = arith.constant 0 : index
    %178 = vector.load %arg0[%c26, %c0_86, %c0_87] : memref<32x8x128xf32, #tpu.memory_space<vmem>>, vector<1x8x128xf32>
    %179 = vector.shape_cast %178 : vector<1x8x128xf32> to vector<8x128xf32>
    %180 = arith.mulf %1, %179 : vector<8x128xf32>
    %c27 = arith.constant 27 : index
    %c0_88 = arith.constant 0 : index
    %c0_89 = arith.constant 0 : index
    %181 = vector.load %arg0[%c27, %c0_88, %c0_89] : memref<32x8x128xf32, #tpu.memory_space<vmem>>, vector<1x8x128xf32>
    %182 = vector.shape_cast %181 : vector<1x8x128xf32> to vector<8x128xf32>
    %183 = arith.mulf %3, %182 : vector<8x128xf32>
    %184 = arith.addf %180, %183 : vector<8x128xf32>
    %c28 = arith.constant 28 : index
    %c0_90 = arith.constant 0 : index
    %c0_91 = arith.constant 0 : index
    %185 = vector.load %arg0[%c28, %c0_90, %c0_91] : memref<32x8x128xf32, #tpu.memory_space<vmem>>, vector<1x8x128xf32>
    %186 = vector.shape_cast %185 : vector<1x8x128xf32> to vector<8x128xf32>
    %187 = arith.addf %184, %186 : vector<8x128xf32>
    %c29 = arith.constant 29 : index
    %c0_92 = arith.constant 0 : index
    %c0_93 = arith.constant 0 : index
    %188 = vector.load %arg0[%c29, %c0_92, %c0_93] : memref<32x8x128xf32, #tpu.memory_space<vmem>>, vector<1x8x128xf32>
    %189 = vector.shape_cast %188 : vector<1x8x128xf32> to vector<8x128xf32>
    %190 = arith.mulf %1, %189 : vector<8x128xf32>
    %c30 = arith.constant 30 : index
    %c0_94 = arith.constant 0 : index
    %c0_95 = arith.constant 0 : index
    %191 = vector.load %arg0[%c30, %c0_94, %c0_95] : memref<32x8x128xf32, #tpu.memory_space<vmem>>, vector<1x8x128xf32>
    %192 = vector.shape_cast %191 : vector<1x8x128xf32> to vector<8x128xf32>
    %193 = arith.mulf %3, %192 : vector<8x128xf32>
    %194 = arith.addf %190, %193 : vector<8x128xf32>
    %c31 = arith.constant 31 : index
    %c0_96 = arith.constant 0 : index
    %c0_97 = arith.constant 0 : index
    %195 = vector.load %arg0[%c31, %c0_96, %c0_97] : memref<32x8x128xf32, #tpu.memory_space<vmem>>, vector<1x8x128xf32>
    %196 = vector.shape_cast %195 : vector<1x8x128xf32> to vector<8x128xf32>
    %197 = arith.addf %194, %196 : vector<8x128xf32>
    %cst_98 = arith.constant 1.000000e-10 : f32
    %198 = vector.broadcast %cst_98 : f32 to vector<8x128xf32>
    %199 = arith.addf %197, %198 : vector<8x128xf32>
    %cst_99 = arith.constant 1.000000e+00 : f32
    %200 = vector.broadcast %cst_99 : f32 to vector<8x128xf32>
    %201 = arith.divf %200, %199 : vector<8x128xf32>
    %202 = arith.mulf %177, %201 : vector<8x128xf32>
    %203 = arith.mulf %187, %201 : vector<8x128xf32>
    %cst_100 = arith.constant -4.500000e+01 : f32
    %204 = vector.broadcast %cst_100 : f32 to vector<8x128xf32>
    %205 = arith.cmpf ogt, %202, %204 : vector<8x128xf32>
    %cst_101 = arith.constant 4.500000e+01 : f32
    %206 = vector.broadcast %cst_101 : f32 to vector<8x128xf32>
    %207 = arith.cmpf olt, %202, %206 : vector<8x128xf32>
    %208 = arith.andi %205, %207 : vector<8x128xi1>
    %cst_102 = arith.constant 0.000000e+00 : f32
    %209 = vector.broadcast %cst_102 : f32 to vector<8x128xf32>
    %210 = arith.cmpf ogt, %203, %209 : vector<8x128xf32>
    %211 = arith.andi %208, %210 : vector<8x128xi1>
    %cst_103 = arith.constant 8.000000e+01 : f32
    %212 = vector.broadcast %cst_103 : f32 to vector<8x128xf32>
    %213 = arith.cmpf olt, %203, %212 : vector<8x128xf32>
    %214 = arith.andi %211, %213 : vector<8x128xi1>
    %215 = arith.andi %214, %11 : vector<8x128xi1>
    %216 = arith.subf %202, %5 : vector<8x128xf32>
    %217 = arith.subf %203, %7 : vector<8x128xf32>
    %218 = math.absf %216 : vector<8x128xf32>
    %219 = math.absf %217 : vector<8x128xf32>
    %cst_104 = arith.constant 1.000000e+00 : f32
    %220 = vector.broadcast %cst_104 : f32 to vector<8x128xf32>
    %221 = arith.cmpf olt, %218, %220 : vector<8x128xf32>
    %cst_105 = arith.constant 5.000000e-01 : f32
    %222 = vector.broadcast %cst_105 : f32 to vector<8x128xf32>
    %223 = arith.mulf %222, %216 : vector<8x128xf32>
    %224 = arith.mulf %223, %216 : vector<8x128xf32>
    %cst_106 = arith.constant 5.000000e-01 : f32
    %225 = vector.broadcast %cst_106 : f32 to vector<8x128xf32>
    %226 = arith.subf %218, %225 : vector<8x128xf32>
    %227 = arith.select %221, %224, %226 : vector<8x128xi1>, vector<8x128xf32>
    %cst_107 = arith.constant 1.000000e+00 : f32
    %228 = vector.broadcast %cst_107 : f32 to vector<8x128xf32>
    %229 = arith.cmpf olt, %219, %228 : vector<8x128xf32>
    %cst_108 = arith.constant 5.000000e-01 : f32
    %230 = vector.broadcast %cst_108 : f32 to vector<8x128xf32>
    %231 = arith.mulf %230, %217 : vector<8x128xf32>
    %232 = arith.mulf %231, %217 : vector<8x128xf32>
    %cst_109 = arith.constant 5.000000e-01 : f32
    %233 = vector.broadcast %cst_109 : f32 to vector<8x128xf32>
    %234 = arith.subf %219, %233 : vector<8x128xf32>
    %235 = arith.select %229, %232, %234 : vector<8x128xi1>, vector<8x128xf32>
    %236 = arith.addf %227, %235 : vector<8x128xf32>
    %cst_110 = arith.constant 0.000000e+00 : f32
    %237 = vector.broadcast %cst_110 : f32 to vector<8x128xf32>
    %238 = arith.select %215, %236, %237 : vector<8x128xi1>, vector<8x128xf32>
    %cst_111 = arith.constant dense<0.000000e+00> : vector<128xf32>
    %239 = vector.multi_reduction <add>, %238, %cst_111 [0] : vector<8x128xf32> to vector<128xf32>
    %240 = vector.shape_cast %239 : vector<128xf32> to vector<1x128xf32>
    %cst_112 = arith.constant 1.000000e+00 : f32
    %cst_113 = arith.constant 0.000000e+00 : f32
    %241 = vector.broadcast %cst_112 : f32 to vector<8x128xf32>
    %242 = vector.broadcast %cst_113 : f32 to vector<8x128xf32>
    %243 = arith.select %215, %241, %242 : vector<8x128xi1>, vector<8x128xf32>
    %cst_114 = arith.constant dense<0.000000e+00> : vector<128xf32>
    %244 = vector.multi_reduction <add>, %243, %cst_114 [0] : vector<8x128xf32> to vector<128xf32>
    %245 = vector.shape_cast %244 : vector<128xf32> to vector<1x128xf32>
    %cst_115 = arith.constant 0.000000e+00 : f32
    %246 = vector.broadcast %cst_115 : f32 to vector<1x128xf32>
    %247 = tpu.concatenate %84, %162, %240, %89, %167, %245, %246, %246 in 0 : vector<1x128xf32>, vector<1x128xf32>, vector<1x128xf32>, vector<1x128xf32>, vector<1x128xf32>, vector<1x128xf32>, vector<1x128xf32>, vector<1x128xf32> -> vector<8x128xf32>
    %c0_116 = arith.constant 0 : index
    %c0_117 = arith.constant 0 : index
    %248 = vector.load %arg1[%c0_116, %c0_117] : memref<8x128xf32, #tpu.memory_space<vmem>>, vector<8x128xf32>
    tpu.vector_store %arg1[%c0_116, %c0_117], %247 {strides = array<i32>} : memref<8x128xf32, #tpu.memory_space<vmem>>, vector<8x128xf32>,
    return
  }
}

</mosaic_0001>

<bundles_post_ra>
// kernel: mul.40
= control target key start
LH: loop header
LB: loop body
LE: loop exit
PB: predicated region body
PF: predicated region fallthrough
CT: control target
= control target key end

     0   :  { %s7_s6 = smov 3  ;;  %s21_s9 = smov 3  ;;  %vm4_vm0 = vcmask 39936   ;;  %vm11_vm1 = vcmask 326936   ;;  %vm18_vm2 = vcmask 285936   ;;  %vm25_vm3 = vcmask 244936   ;;  %s121_s0 = inlined_call_operand.vmem [shape: f32[2,8,5], index: 0, kind: input, shape index: {}]   ;;  %s122_s1 = inlined_call_operand.vmem [shape: f32[2,40], index: 1, kind: output, shape index: {}]  }
   0x1   :  { %v63_v0 = vld [vmem:[%s121_s0 + $0x7] ss:$8 sm:%s7_s6]   ;;  %s77_s10 = smov 35   ;;  %v65_v1 = vld [vmem:[%s121_s0 + $0x5] ss:$8 sm:%s21_s9]   ;;  %s14_s13 = smov 3 }
   0x2   :  { %9 = vrot.lane.b32.xlu0 %v63_v0, %s77_s10  ;;  %s78_s14 = smov 25   ;;  %v64_v2 = vld [vmem:[%s121_s0 + $0x6] ss:$8 sm:%s14_s13]   ;;  %s28_s17 = smov 3  ;;  %vm32_vm4 = vcmask 203936   ;;  %vm39_vm5 = vcmask 162936  }
   0x3   :  { %23 = vrot.lane.b32.xlu1 %v65_v1, %s78_s14  ;;  %v66_v3 = vld [vmem:[%s121_s0 + $0x4] ss:$8 sm:%s28_s17]   ;;  %s35_s20 = smov 3  ;;  %s42_s21 = smov 3  ;;  %vm46_vm6 = vcmask 121936   ;;  %vm53_vm7 = vcmask 80936  }
   0x4   :  { %s79_s22 = smov 30   ;;  %s80_s23 = smov 20   ;;  %v67_v4 = vld [vmem:[%s121_s0 + $0x3] ss:$8 sm:%s35_s20]   ;;  %v68_v5 = vld [vmem:[%s121_s0 + $0x2] ss:$8 sm:%s42_s21]  }
   0x5   :  { %s2_s26 = smov 3  ;;  %s49_s29 = smov 3 }
   0x6   :  { %16 = vrot.lane.b32.xlu0 %v64_v2, %s79_s22  ;;  %v3_v6 = vld [vmem:[%s121_s0] ss:$8 sm:%s2_s26]   ;;  %s81_s3 = smov 15   ;;  %s82_s4 = smov 10  }
   0x7   :  { %30 = vrot.lane.b32.xlu1 %v66_v3, %s80_s23  ;;  %5 = vst.msk [vmem:[#allocation0] sm:$0x3] %vm4_vm0, %v3_v6   ;;  %v69_v7 = vld [vmem:[%s121_s0 + $0x1] ss:$8 sm:%s49_s29]   ;;  %s83_s0 = smov 5  }
   0xa   :  { %37 = vrot.lane.b32.xlu0 %v67_v4, %s81_s3 }
   0xb   :  { %44 = vrot.lane.b32.xlu1 %v68_v5, %s82_s4 }
   0xe   :  { %51 = vrot.lane.b32.xlu0 %v69_v7, %s83_s0 }
  0x74   :  { %v10_v8 = vpop.permute.xlu0 %9  }
  0x75   :  { %12 = vst.msk [vmem:[#allocation0] sm:$0x3] %vm11_vm1, %v10_v8   ;;  %v24_v9 = vpop.permute.xlu1 %23  }
  0x78   :  { %v17_v10 = vpop.permute.xlu0 %16  }
  0x79   :  { %19 = vst.msk [vmem:[#allocation0] sm:$0x3] %vm18_vm2, %v17_v10   ;;  %v31_v11 = vpop.permute.xlu1 %30  }
  0x7a   :  { %26 = vst.msk [vmem:[#allocation0] sm:$0x3] %vm25_vm3, %v24_v9  }
  0x7b   :  { %33 = vst.msk [vmem:[#allocation0] sm:$0x3] %vm32_vm4, %v31_v11  }
  0x7c   :  { %v38_v12 = vpop.permute.xlu0 %37  }
  0x7d   :  { %40 = vst.msk [vmem:[#allocation0] sm:$0x3] %vm39_vm5, %v38_v12   ;;  %v45_v13 = vpop.permute.xlu1 %44  }
  0x7e   :  { %47 = vst.msk [vmem:[#allocation0] sm:$0x3] %vm46_vm6, %v45_v13  }
  0x80   :  { %v52_v14 = vpop.permute.xlu0 %51  }
  0x81   :  { %54 = vst.msk [vmem:[#allocation0] sm:$0x3] %vm53_vm7, %v52_v14  }
  0x88   :  { %v59_v15 = vld [vmem:[#allocation0] sm:$0x3] }
  0x89   :  { %62 = vst [vmem:[%s122_s1] sm:$0x3] %v59_v15 }

// kernel: tile.42
= control target key start
LH: loop header
LB: loop body
LE: loop exit
PB: predicated region body
PF: predicated region fallthrough
CT: control target
= control target key end

     0   :  { %vm17_vm0 = vcmask 130048   ;;  %s45_s12 = smov 16   ;;  %vm23_vm1 = vcmask 392448   ;;  %vm29_vm2 = vcmask 261248   ;;  %s68_s0 = inlined_call_operand.vmem [shape: f32[3,16,3], index: 0, kind: input, shape index: {}]   ;;  %s69_s1 = inlined_call_operand.vmem [shape: f32[48,3], index: 1, kind: output, shape index: {}]  }
   0x1   :  { %v40_v0 = vld [vmem:[%s68_s0 + $0x8] sm:$0xf]  ;;  %v41_v1 = vld [vmem:[%s68_s0 + $0x4] sm:$0xf]  ;;  %v14_v2 = vld [vmem:[%s68_s0] sm:$0xf] }
   0x2   :  { %9 = vst [vmem:[#allocation1 + $0x10] sm:$0xf] %v40_v0  ;;  %13 = vst [vmem:[#allocation1 + $0x8] sm:$0xf] %v41_v1  ;;  %s44_s0 = smov 32  }
   0x3   :  { %15 = vst [vmem:[#allocation1] sm:$0xf] %v14_v2 }
   0xa   :  { %v20_v3 = vld [vmem:[#allocation1 + $0x2] ss:$8 sm:$0x7]   ;;  %v16_v4 = vld [vmem:[#allocation1] ss:$8 sm:$0x7]  }
   0xb   :  { %21 = vrot.lane.b32.xlu0 %v20_v3, %s44_s0  ;;  %v26_v5 = vld [vmem:[#allocation1 + $0x1] ss:$8 sm:$0x7]   ;;  %18 = vst.msk [vmem:[#allocation0] sm:$0x7] %vm17_vm0, %v16_v4  }
   0xf   :  { %27 = vrot.lane.b32.xlu0 %v26_v5, %s45_s12 }
  0x7d   :  { %v22_v6 = vpop.permute.xlu0 %21  }
  0x7e   :  { %24 = vst.msk [vmem:[#allocation0] sm:$0x7] %vm23_vm1, %v22_v6  }
  0x81   :  { %v28_v7 = vpop.permute.xlu0 %27  }
  0x82   :  { %30 = vst.msk [vmem:[#allocation0] sm:$0x7] %vm29_vm2, %v28_v7  }
  0x89   :  { %v35_v8 = vld [vmem:[#allocation0] sm:$0xf] }
  0x8a   :  { %38 = vst [vmem:[%s69_s1] sm:$0xf] %v35_v8 }

// kernel: tile.37
= control target key start
LH: loop header
LB: loop body
LE: loop exit
PB: predicated region body
PF: predicated region fallthrough
CT: control target
= control target key end

     0   :  { %s41_s18 = smov 48  ;;  %s52_s19 = smov 48  ;;  %vm34_vm0 = vcmask 1045508   ;;  %vm36_vm1 = vcmask 130048   ;;  %vm47_vm2 = vcmask 392448   ;;  %vm58_vm3 = vcmask 261248   ;;  %s110_s0 = inlined_call_operand.vmem [shape: f32[3,16,6], index: 0, kind: input, shape index: {}]   ;;  %s111_s1 = inlined_call_operand.vmem [shape: f32[48,6], index: 1, kind: output, shape index: {}]  }
   0x1   :  { %v64_v0 = vld [vmem:[%s110_s0 + $0x14] sm:$0xf]  ;;  %v65_v1 = vld [vmem:[%s110_s0 + $0x10] sm:$0xf]  ;;  %v66_v2 = vld [vmem:[%s110_s0 + $0xc] sm:$0xf] }
   0x2   :  { %9 = vst [vmem:[#allocation0 + $0x28] sm:$0xf] %v64_v0  ;;  %14 = vst [vmem:[#allocation0 + $0x20] sm:$0xf] %v65_v1  ;;  %v67_v3 = vld [vmem:[%s110_s0 + $0x8] sm:$0xf] }
   0x3   :  { %19 = vst [vmem:[#allocation0 + $0x18] sm:$0xf] %v66_v2  ;;  %v68_v4 = vld [vmem:[%s110_s0 + $0x4] sm:$0xf]  ;;  %v29_v5 = vld [vmem:[%s110_s0] sm:$0xf] }
   0x4   :  { %24 = vst [vmem:[#allocation0 + $0x10] sm:$0xf] %v67_v3  ;;  %28 = vst [vmem:[#allocation0 + $0x8] sm:$0xf] %v68_v4  ;;  %s32_s0 = smov 48  ;;  %s71_s20 = smov 32  }
   0x5   :  { %30 = vst [vmem:[#allocation0] sm:$0xf] %v29_v5  ;;  %s72_s23 = smov 16  }
   0xc   :  { %v31_v6 = vld [vmem:[#allocation0] ss:$8 sm:$0xf]   ;;  %v39_v7 = vld [vmem:[#allocation0 + $0x2] ss:$8 sm:$0xf]  }
   0xd   :  { %v42_v8 = vld [vmem:[#allocation0 + $0x2] ss:$8 sm:%s41_s18]   ;;  %v33_v9 = vld [vmem:[#allocation0] ss:$8 sm:%s32_s0]   ;;  %v53_v10 = vld [vmem:[#allocation0 + $0x1] ss:$8 sm:%s52_s19]  }
   0xe   :  { %v44_v11 = vsel %vm34_vm0, %v42_v8, %v39_v7  ;;  %v35_v12 = vsel %vm34_vm0, %v33_v9, %v31_v6  ;;  %v50_v13 = vld [vmem:[#allocation0 + $0x1] ss:$8 sm:$0xf]  }
   0xf   :  { %45 = vrot.lane.b32.xlu0 %v44_v11, %s71_s20  ;;  %37 = vst.msk [vmem:[%s111_s1] sm:$0x3f] %vm36_vm1, %v35_v12   ;;  %v55_v14 = vsel %vm34_vm0, %v53_v10, %v50_v13 }
  0x13   :  { %56 = vrot.lane.b32.xlu0 %v55_v14, %s72_s23 }
  0x81   :  { %v46_v15 = vpop.permute.xlu0 %45  }
  0x82   :  { %48 = vst.msk [vmem:[%s111_s1] sm:$0x3f] %vm47_vm2, %v46_v15  }
  0x85   :  { %v57_v16 = vpop.permute.xlu0 %56  }
  0x86   :  { %59 = vst.msk [vmem:[%s111_s1] sm:$0x3f] %vm58_vm3, %v57_v16  }

// kernel: custom-call.2
= control target key start
LH: loop header
LB: loop body
LE: loop exit
PB: predicated region body
PF: predicated region fallthrough
CT: control target
= control target key end

     0   :  { %s2192_s0 = inlined_call_operand.vmem [shape: f32[3,2,5,5], index: 0, kind: input, shape index: {}]   ;;  %s2193_s1 = inlined_call_operand.vmem [shape: f32[3,2,5,5], index: 1, kind: input, shape index: {}]   ;;  %s2194_s2 = inlined_call_operand.vmem [shape: f32[3,2,5,5], index: 2, kind: input, shape index: {}]   ;;  %s2195_s3 = inlined_call_operand.vmem [shape: f32[3,2,5,5], index: 3, kind: input, shape index: {}]   ;;  %s2196_s4 = inlined_call_operand.vmem [shape: f32[3,2,5], index: 4, kind: output, shape index: {0}]   ;;  %s2197_s5 = inlined_call_operand.vmem [shape: f32[3,2,5], index: 5, kind: output, shape index: {1}]   ;;  %s2198_s6 = inlined_call_operand.vmem [shape: f32[3,2,5,5], index: 6, kind: output, shape index: {2}]   ;;  %s2199_s7 = inlined_call_operand.vmem [shape: f32[3,2,5,5], index: 7, kind: output, shape index: {3}]   ;;  %s2200_s8 = inlined_call_operand.vmem [shape: f32[3,2,5,5], index: 8, kind: output, shape index: {4}]   ;;  %s2201_s9 = inlined_call_operand.vmem [shape: f32[3,2,5,5], index: 9, kind: output, shape index: {5}]  }
   0x1   :  { %2207 = sst [smem:[#allocation30_spill]] %s2201_s9 }
   0x2   :  { %s1824_s30 = smov 0   ;;  %s1826_s10 = smov 0  }
   0x3   :  { %s1828_s11 = smov 0   ;;  %s1830_s12 = smov 0  }
   0x4   :  { %s1832_s13 = smov 0   ;;  %s1834_s14 = smov 0  }
   0x5   :  { %s1836_s15 = smov 0  }
   0x6 LB: > { %2208 = sst [smem:[#allocation25_spill]] %s1741_s10  ;;  %s25_s16 = sadd.s32 1, %s1753_s13  ;;  %s1761_s15 = sphi %s1836_s15, %s16_s15   ;;  %s1757_s14 = sphi %s1834_s14, %s2223_s14   ;;  %s1753_s13 = sphi %s1832_s13, %s2225_s13   ;;  %s1749_s12 = sphi %s1830_s12, %s2221_s12   ;;  %s1745_s11 = sphi %s1828_s11, %s2224_s11   ;;  %s1741_s10 = sphi %s1826_s10, %s2220_s10   ;;  %s1737_s30 = sphi %s1824_s30, %s2219_s30  }
   0x7   : > { %2209 = sst [smem:[#allocation26_spill]] %s1757_s14  ;;  %p26_p0 = scmp.ge.s32.totalorder %s25_s16, 2 }
   0x8   : > { %s28_s17 = sadd.s32 1, %s1757_s14  ;;  %s2202_s18 = sadd.s32 4294967295, %s1761_s15  }
   0x9   : > { %s32_s19 = sshrl.u32 %s1753_s13, 3  ;;  %s2227_s16 = smov (%p26_p0, %s25_s16), 0 }
   0xa   : > { %2210 = sst [smem:[#allocation27_spill]] %s2227_s16  ;;  %s2229_s17 = smov (!%p26_p0, %s28_s17), %s1757_s14 }
   0xb   : > { %s33_s20 = sshrl.u32 %s2227_s16, 3  ;;  %p49_p1 = scmp.ne.s32.totalorder %s1741_s10, %s1737_s30 }
   0xc   : > { %p30_p2 = scmp.ge.s32.totalorder %s2229_s17, 3  ;;  %s35_s21 = ssub.s32 %s32_s19, %s33_s20 }
   0xd   : > { %p50_p3 = scmp.eq.s32.totalorder %s2202_s18, 5  ;;  %s39_s25 = sadd.s32 1, %s1741_s10 }
   0xe   : > { %s2231_s17 = smov (%p30_p2, %s2229_s17), 0  ;;  %p1550_p6 = scmp.ge.s32.totalorder %s1761_s15, 6 }
   0xf   : > { %2211 = sst [smem:[#allocation28_spill]] %s2231_s17  ;;  %p1873_p4 = por %p50_p3, %p49_p1 }
  0x10   : > { %s34_s23 = ssub.s32 %s1757_s14, %s2231_s17  ;;  %s104_s27 = sand.u32 (!%p1550_p6), 1, %s1761_s15  }
  0x11   : > { %s36_s24 = sor.u32 %s35_s21, %s34_s23  ;;  %s1552_s28 = sshll.u32 (!%p1550_p6), %s1757_s14, 1 }
  0x12   : > { %p37_p5 = scmp.eq.s32.totalorder %s36_s24, 0  ;;  %102 = sbr.rel (%p1550_p6) target bundleno = 28 (0x1c), region = 16 }
  0x13   : > { %s1551_s29 = sshll.u32 (!%p1550_p6), %s104_s27, 3  ;;  %s108_s19 = sadd.s32 (!%p1550_p6), %s1753_s13, %s1552_s28 }
  0x14   : > { %s1881_s26 = scalar_select %p37_p5, %s1741_s10, %s39_s25  }
  0x15   : > { %s1553_s20 = sshll.u32 (!%p1550_p6), %s108_s19, 3  ;;  %s106_s25 = scalar_lea.vmem (!%p1550_p6), [#allocation0], %s1551_s29 }
  0x16   : > { %2213 = sst [smem:[#allocation29_spill]] %s1881_s26  ;;  %s110_s17 = scalar_lea.vmem (!%p1550_p6), %s2192_s0, %s1553_s20 }
  0x17   : > { %v139_v0 = vld [vmem:[%s110_s17] sm:$0xff]  ;;  %s151_s24 = scalar_lea.vmem %s2193_s1, %s1553_s20  ;;  %s192_s9 = scalar_lea.vmem %s2194_s2, %s1553_s20 }
  0x18   : > { %140 = vst [vmem:[%s106_s25] sm:$0xff] %v139_v0  ;;  %v180_v1 = vld [vmem:[%s151_s24] sm:$0xff]  ;;  %s147_s14 = scalar_lea.vmem [#allocation1], %s1551_s29  ;;  %s233_s16 = scalar_lea.vmem %s2195_s3, %s1553_s20 }
  0x19   : > { %181 = vst [vmem:[%s147_s14] sm:$0xff] %v180_v1  ;;  %v221_v2 = vld [vmem:[%s192_s9] sm:$0xff]  ;;  %s188_s18 = scalar_lea.vmem [#allocation2], %s1551_s29  ;;  %s229_s17 = scalar_lea.vmem [#allocation3], %s1551_s29 }
  0x1a   : > { %222 = vst [vmem:[%s188_s18] sm:$0xff] %v221_v2  ;;  %v262_v3 = vld [vmem:[%s233_s16] sm:$0xff] }
  0x1b   : > { %263 = vst [vmem:[%s229_s17] sm:$0xff] %v262_v3 }
  0x1c PF: > { %p1563_p7 = scmp.ge.s32.totalorder %s1761_s15, 1  ;;  %p268_p8 = scmp.lt.s32.totalorder %s1761_s15, 7 }
  0x1e   : > { %p269_p9 = pnand %p1563_p7, %p268_p8 }
  0x20   : > { %272 = sbr.rel (%p269_p9) target bundleno = 1000 (0x3e8), region = 156 }
  0x25   : > { %s2214_s10 = sadd.s32 4294967295, %s1761_s15   ;;  %s309_s14 = sand.u32 1, %s1737_s30   ;;  %v353_v4 = vlaneseq  ;;  %v1771_v11 = vmov 0.0  }
  0x26   : > { %s275_s9 = sand.u32 1, %s2214_s10   ;;  %s1904_s19 = sshll.u32 %s309_s14, 1 }
  0x27   : > { %s1564_s26 = sshll.u32 %s275_s9, 3  ;;  %v1906_v5 = vand.u32 127, %v353_v4  ;;  %v1908_v6 = vshrl.u32 %v353_v4, 7  ;;  %s336_s25 = smov [#allocation12] }
  0x28   : > { %s277_s29 = scalar_lea.vmem [#allocation0], %s1564_s26  ;;  %s281_s20 = scalar_lea.vmem [#allocation1], %s1564_s26 }
  0x29   : > { %v337_v7 = vld [vmem:[%s277_s29] sm:$0xff]  ;;  %v340_v8 = vld [vmem:[%s281_s20] sm:$0xff]  ;;  %s285_s21 = scalar_lea.vmem [#allocation2], %s1564_s26  ;;  %s289_s23 = scalar_lea.vmem [#allocation3], %s1564_s26  ;;  %v355_v5 = vmov %v1906_v5  ;;  %v358_v6 = vmov %v1908_v6  ;;  %vm1427_vm2 = vcmp.lt.s32.totalorder %v1906_v5, 5 }
  0x2a   : > { %v343_v9 = vld [vmem:[%s285_s21] sm:$0xff]  ;;  %v346_v10 = vld [vmem:[%s289_s23] sm:$0xff]  ;;  %s1910_s24 = scalar_lea.vmem [#allocation8], %s1564_s26  ;;  %s1913_s30 = scalar_lea.vmem [#allocation9], %s1564_s26  ;;  %338 = vst [vmem:[%s336_s25] sm:$0xff] %v337_v7  ;;  %v368_v5 = vmov %v1906_v5  ;;  %v371_v6 = vmov %v1908_v6  ;;  %vm362_vm0 = vcmp.eq.s32.totalorder %v358_v6, %v355_v5 }
  0x2b   : > { %348 = vst [vmem:[%s1910_s24] sm:$0xff] %v1771_v11  ;;  %349 = vst [vmem:[%s1913_s30] sm:$0xff] %v1771_v11  ;;  %s339_s27 = smov [#allocation13]  ;;  %s1916_s28 = scalar_lea.vmem [#allocation10], %s1564_s26  ;;  %vm375_vm1 = vcmp.eq.s32.totalorder %v371_v6, %v368_v5  ;;  %v1419_v5 = vmov %v1906_v5  ;;  %v1422_v6 = vmov %v1908_v6 }
  0x2c   : > { %350 = vst [vmem:[%s1916_s28] sm:$0xff] %v1771_v11  ;;  %s1919_s16 = scalar_lea.vmem [#allocation11], %s1564_s26  ;;  %341 = vst [vmem:[%s339_s27] sm:$0xff] %v340_v8  ;;  %s342_s18 = smov [#allocation14]  ;;  %vm1432_vm3 = vcmp.eq.s32.totalorder %v1422_v6, %v1419_v5  ;;  %v1470_v5 = vmov %v1906_v5  ;;  %v1439_v6 = vmov %v1908_v6 }
  0x2d   : > { %351 = vst [vmem:[%s1919_s16] sm:$0xff] %v1771_v11  ;;  %s345_s17 = smov [#allocation15]  ;;  %344 = vst [vmem:[%s342_s18] sm:$0xff] %v343_v9  ;;  %s352_s24 = smov %s1910_s24  ;;  %v1436_v5 = vmov %v1906_v5  ;;  %v1473_v6 = vmov %v1908_v6 }
  0x2e   : > { %347 = vst [vmem:[%s345_s17] sm:$0xff] %v346_v10  ;;  %s365_s16 = smov %s1919_s16  ;;  %s311_s10 = scalar_lea.vmem [#allocation5], %s1904_s19  ;;  %v1453_v5 = vmov %v1906_v5  ;;  %v1456_v6 = vmov %v1908_v6  ;;  %vm1483_vm4 = vcmp.eq.s32.totalorder %v1473_v6, %v1470_v5 }
  0x2f   : > { %s1423_s14 = smov [#allocation12]  ;;  %s1440_s26 = smov [#allocation13] }
  0x30   : > { %s1457_s29 = smov [#allocation14]  ;;  %s1474_s20 = smov [#allocation15] }
  0x31   : > { %v1429_v16 = vld [vmem:[%s1423_s14] sm:$0x1f] }
  0x32   : > { %v359_v12 = vld [vmem:[%s352_s24] sm:$0x1f]  ;;  %v1430_v18 = vsel %vm1427_vm2, %v1429_v16, 0.0 }
  0x33   : > { %v363_v13 = vsel %vm362_vm0, 1.0, %v359_v12  ;;  %v1446_v17 = vld [vmem:[%s1440_s26] sm:$0x1f]  ;;  %v1431_v22 = vmul.f32 %v1430_v18, %v1430_v18 }
  0x34   : > { %v372_v14 = vld [vmem:[%s365_s16] sm:$0x1f]  ;;  %364 = vst [vmem:[%s352_s24] sm:$0x1f] %v363_v13  ;;  %v1447_v19 = vsel %vm1427_vm2, %v1446_v17, 0.0 }
  0x35   : > { %v376_v15 = vsel %vm375_vm1, 1.0, %v372_v14  ;;  %v1463_v20 = vld [vmem:[%s1457_s29] sm:$0x1f]  ;;  %v1448_v23 = vmul.f32 %v1447_v19, %v1447_v19  ;;  %v1433_v29 = vsel %vm1432_vm3, 0.0, %v1431_v22 }
  0x36   : > { %377 = vst [vmem:[%s365_s16] sm:$0x1f] %v376_v15  ;;  %v1480_v21 = vld [vmem:[%s1474_s20] sm:$0x1f]  ;;  %v1464_v24 = vsel %vm1427_vm2, %v1463_v20, 0.0 }
  0x37   : > { %v1481_v25 = vsel %vm1427_vm2, %v1480_v21, 0.0  ;;  %v1465_v26 = vmul.f32 %v1464_v24, %v1464_v24  ;;  %v1450_v27 = vadd.f32 %v1448_v23, %v1431_v22  ;;  %v1449_v30 = vadd.f32 %v1448_v23, %v1433_v29 }
  0x38   : > { %v1482_v28 = vmul.f32 %v1481_v25, %v1481_v25 }
  0x39   : > { %v1467_v31 = vadd.f32 %v1465_v26, %v1450_v27  ;;  %v1466_v32 = vadd.f32 %v1465_v26, %v1449_v30 }
  0x3a   : > { %v1484_v33 = vsel %vm1483_vm4, 0.0, %v1482_v28 }
  0x3b   : > { %v1486_v34 = vadd.f32 %v1482_v28, %v1467_v31  ;;  %v1485_v35 = vadd.f32 %v1484_v33, %v1466_v32 }
  0x3d   : > { %1487 = vadd.xlane.f32.xlu0 %v1486_v34 }
  0x41   : > { %1495 = vadd.xlane.f32.xlu0 %v1485_v35 }
  0xc6   : > { %v1488_v36 = vpop.xlane.xlu0 %1487 }
  0xc7   : > { %v1489_v37 = vrot.slane %v1488_v36, 4 }
  0xc9   : > { %v1490_v38 = vadd.f32 %v1489_v37, %v1488_v36 }
  0xca   : > { %v1496_v39 = vpop.xlane.xlu0 %1495 }
  0xcb   : > { %v1491_v40 = vrot.slane %v1490_v38, 2  ;;  %v1497_v41 = vrot.slane %v1496_v39, 4 }
  0xcd   : > { %v1498_v42 = vadd.f32 %v1497_v41, %v1496_v39  ;;  %v1492_v43 = vadd.f32 %v1491_v40, %v1490_v38 }
  0xcf   : > { %v1499_v44 = vrot.slane %v1498_v42, 2  ;;  %v1493_v46 = vrot.slane %v1492_v43, 1 }
  0xd1   : > { %v1500_v45 = vadd.f32 %v1499_v44, %v1498_v42  ;;  %v1494_v49 = vadd.f32 %v1493_v46, %v1492_v43 }
  0xd3   : > { %v1501_v47 = vrot.slane %v1500_v45, 1 }
  0xd5   : > { %v1502_v48 = vadd.f32 %v1501_v47, %v1500_v45 }
  0xd7   : > { %1608 = vpush %v1502_v48 }
  0xd8   : > { %1610 = vpush %v1494_v49 }
 0x108   : > { %s1609_s21 = spop %1608 }
 0x109   : > { %s1611_s23 = spop %1610 }
 0x10a   : > { %s1505_s25 = smul.f32 1e-10, %s1611_s23 }
 0x10c   : > { %p1506_p10 = scmp.le.f32.partialorder %s1609_s21, %s1505_s25 }
 0x10d   : > { %s1948_s27 = smov (!%p1506_p10), 0  }
 0x10e   : > { %1509 = sbr.rel (%p1506_p10) target bundleno = 952 (0x3b8), region = 499 }
 0x113 LB: >> { %s1953_s18 = smov 0   ;;  %s1765_s27 = sphi %s1948_s27, %s2215_s27  }
 0x114 LB: >>> { %s482_s17 = smov [#allocation12]  ;;  %v486_v5 = vmov %v1906_v5  ;;  %v489_v6 = vmov %v1908_v6  ;;  %s502_s14 = smov [#allocation13]  ;;  %vm805_vm14 = vcmp.eq.s32.totalorder %v1908_v6, 0  ;;  %vm817_vm15 = vcmp.eq.s32.totalorder %v1908_v6, 4  ;;  %s1769_s18 = sphi %s1953_s18, %s481_s18  }
 0x115   : >>> { %v506_v5 = vmov %v1906_v5  ;;  %v509_v6 = vmov %v1908_v6  ;;  %v490_v50 = vld [vmem:[%s482_s17] sm:$0x1f]  ;;  %vm493_vm5 = vcmp.eq.s32.totalorder %v489_v6, %v486_v5  ;;  %s522_s26 = smov [#allocation15]  ;;  %s483_s29 = smov [#allocation16] }
 0x116   : >>> { %vm513_vm6 = vcmp.eq.s32.totalorder %v509_v6, %v506_v5  ;;  %v526_v5 = vmov %v1906_v5  ;;  %v529_v6 = vmov %v1908_v6  ;;  %v494_v51 = vsel %vm493_vm5, %v490_v50, 0.0  ;;  %v510_v52 = vld [vmem:[%s502_s14] sm:$0x1f]  ;;  %s503_s20 = smov [#allocation17]  ;;  %s523_s21 = smov [#allocation18] }
 0x117   : >>> { %vm533_vm7 = vcmp.eq.s32.totalorder %v529_v6, %v526_v5  ;;  %v495_v53 = vrot.slane %v494_v51, 4  ;;  %v514_v54 = vsel %vm513_vm6, %v510_v52, 0.0  ;;  %v530_v55 = vld [vmem:[%s522_s26] sm:$0x1f]  ;;  %s546_s23 = smov [#allocation17]  ;;  %s544_s25 = smov [#allocation16]  ;;  %v595_v5 = vmov %v1906_v5 }
 0x118   : >>> { %v515_v56 = vrot.slane %v514_v54, 4  ;;  %v534_v57 = vsel %vm533_vm7, %v530_v55, 0.0  ;;  %s548_s17 = smov [#allocation18]  ;;  %s583_s14 = smov [#allocation19]  ;;  %v598_v6 = vmov %v1908_v6  ;;  %v610_v5 = vmov %v1906_v5 }
 0x119   : >>> { %v496_v58 = vadd.f32 %v495_v53, %v494_v51  ;;  %v535_v59 = vrot.slane %v534_v57, 4  ;;  %s585_s26 = smov [#allocation20]  ;;  %v613_v6 = vmov %v1908_v6  ;;  %vm600_vm12 = vcmp.eq.s32.totalorder %v598_v6, %v595_v5  ;;  %s1977_s24 = smov %s1910_s24 }
 0x11a   : >>> { %v516_v60 = vadd.f32 %v515_v56, %v514_v54  ;;  %vm615_vm13 = vcmp.eq.s32.totalorder %v613_v6, %v610_v5  ;;  %s1980_s30 = smov %s1913_s30  ;;  %s1983_s28 = smov %s1916_s28  ;;  %v853_v53 = vld [vmem:[%s1977_s24] sm:$0x1f]  ;;  %v708_v5 = vmov %v1906_v5  ;;  %v711_v6 = vmov %v1908_v6 }
 0x11b   : >>> { %v497_v61 = vrot.slane %v496_v58, 2  ;;  %v536_v62 = vadd.f32 %v535_v59, %v534_v57  ;;  %s1988_s16 = smov %s1919_s16  ;;  %v854_v54 = vld [vmem:[%s1980_s30] sm:$0x1f]  ;;  %s847_s9 = smov [#allocation24]  ;;  %v722_v5 = vmov %v1906_v5  ;;  %v725_v6 = vmov %v1908_v6 }
 0x11c   : >>> { %v517_v63 = vrot.slane %v516_v60, 2  ;;  %v855_v55 = vld [vmem:[%s1983_s28] sm:$0x1f]  ;;  %vm715_vm0 = vcmp.eq.s32.totalorder %v711_v6, %v708_v5  ;;  %v681_v5 = vmov %v1906_v5  ;;  %v684_v6 = vmov %v1908_v6  ;;  %s481_s18 = sadd.s32 1, %s1769_s18  }
 0x11d   : >>> { %v498_v0 = vadd.f32 %v497_v61, %v496_v58  ;;  %v537_v1 = vrot.slane %v536_v62, 2  ;;  %v856_v57 = vld [vmem:[%s1988_s16] sm:$0x1f]  ;;  %v695_v5 = vmov %v1906_v5  ;;  %v698_v6 = vmov %v1908_v6  ;;  %p478_p11 = scmp.ge.s32.totalorder %s481_s18, 9  }
 0x11e   : >>> { %v518_v2 = vadd.f32 %v517_v63, %v516_v60  ;;  %vm730_vm1 = vcmp.eq.s32.totalorder %v725_v6, %v722_v5  ;;  %vm689_vm3 = vcmp.eq.s32.totalorder %v684_v6, %v681_v5  ;;  %vm702_vm4 = vcmp.eq.s32.totalorder %v698_v6, %v695_v5 }
 0x11f   : >>> { %v499_v3 = vrot.slane %v498_v0, 1  ;;  %v538_v4 = vadd.f32 %v537_v1, %v536_v62  ;;  %vm744_vm5 = vcmp.eq.s32.totalorder %v1906_v5, 0  ;;  %vm748_vm6 = vcmp.eq.s32.totalorder %v1906_v5, 1 }
 0x120   : >>> { %v519_v7 = vrot.slane %v518_v2, 1  ;;  %vm761_vm7 = vcmp.eq.s32.totalorder %v1906_v5, 4  ;;  %v382_v5 = vmov (%p478_p11), %v1906_v5  ;;  %v385_v6 = vmov (%p478_p11), %v1908_v6 }
 0x121   : >>> { %v500_v8 = vadd.f32 %v499_v3, %v498_v0  ;;  %v539_v9 = vrot.slane %v538_v4, 1  ;;  %v435_v5 = vmov (%p478_p11), %v1906_v5 }
 0x122   : >>> { %v520_v10 = vadd.f32 %v519_v7, %v518_v2 }
 0x123   : >>> { %501 = vst [vmem:[%s483_s29] sm:$0x1] %v500_v8  ;;  %v540_v11 = vadd.f32 %v539_v9, %v538_v4  ;;  %s542_s29 = smov [#allocation21] }
 0x124   : >>> { %521 = vst [vmem:[%s503_s20] sm:$0x1] %v520_v10  ;;  %s543_s20 = smov [#allocation22]  ;;  %s587_s29 = smov %s542_s29 }
 0x125   : >>> { %541 = vst [vmem:[%s523_s21] sm:$0x1] %v540_v11  ;;  %s589_s20 = smov %s543_s20  ;;  %s591_s21 = smov [#allocation21] }
 0x12a   : >>> { %v545_v14 = vld [vmem:[%s544_s25] sm:$0xff]  ;;  %s604_s25 = smov [#allocation23] }
 0x12b   : >>> { %v547_v12 = vld [vmem:[%s546_s23] sm:$0xff]  ;;  %v568_v29 = vand.u32 2147483647, %v545_v14  ;;  %s606_s23 = smov [#allocation22] }
 0x12c   : >>> { %v551_v13 = vmul.f32 2.0, %v547_v12  ;;  %v549_v15 = vld [vmem:[%s548_s17] sm:$0xff]  ;;  %v569_v32 = vand.u32 2147483647, %v547_v12  ;;  %s621_s17 = smov [#allocation23] }
 0x12d   : >>> { %v550_v16 = vsub.f32 %v549_v15, %v545_v14  ;;  %v570_v30 = vand.u32 2147483647, %v549_v15 }
 0x12e   : >>> { %1691 = vrcp.f32 %v551_v13 }
 0x12f   : >>> { %v571_v31 = vmin.f32 %v568_v29, %v570_v30 }
 0x131   : >>> { %v572_v33 = vmul.f32 1.1920929e-08, %v571_v31 }
 0x133   : >>> { %vm573_vm11 = vcmp.le.f32.partialorder %v569_v32, %v572_v33 }
 0x13b   : >>> { %v1692_v17 = vpop.eup %1691 }
 0x13c   : >>> { %v553_v18 = vmul.f32 %v1692_v17, %v550_v16 }
 0x13e   : >>> { %v555_v19 = vmul.f32 %v553_v18, %v553_v18  ;;  %vm554_vm10 = vcmp.ge.f32.partialorder %v553_v18, 0.0 }
 0x140   : >>> { %v556_v20 = vadd.f32 1.0, %v555_v19 }
 0x142   : >>> { %1693 = vrsqrt.f32 %v556_v20  ;;  %vm559_vm8 = vcmp.eq.f32.partialorder %v556_v20, inf  ;;  %v562_v22 = vand.u32 2147483648, %v556_v20  ;;  %vm561_vm9 = vcmp.eq.f32.partialorder %v556_v20, 0.0 }
 0x14f   : >>> { %v1694_v21 = vpop.eup %1693 }
 0x150   : >>> { %v558_v23 = vmul.f32 %v1694_v21, %v556_v20 }
 0x152   : >>> { %v560_v24 = vsel %vm559_vm8, %v556_v20, %v558_v23  ;;  %vm397_vm8 = vcmp.eq.s32.totalorder (%p478_p11), %v385_v6, %v382_v5  ;;  %v438_v6 = vmov (%p478_p11), %v1908_v6  ;;  %v401_v5 = vmov (%p478_p11), %v1906_v5 }
 0x153   : >>> { %v563_v25 = vsel %vm561_vm9, %v562_v22, %v560_v24  ;;  %v404_v6 = vmov (%p478_p11), %v1908_v6  ;;  %v418_v5 = vmov (%p478_p11), %v1906_v5  ;;  %vm450_vm9 = vcmp.eq.s32.totalorder (%p478_p11), %v438_v6, %v435_v5 }
 0x154   : >>> { %v564_v26 = vxor.u32 2147483648, %v563_v25  ;;  %v421_v6 = vmov (%p478_p11), %v1908_v6 }
 0x156   : >>> { %v565_v27 = vsel %vm554_vm10, %v563_v25, %v564_v26 }
 0x157   : >>> { %v566_v28 = vadd.f32 %v565_v27, %v553_v18 }
 0x159   : >>> { %1695 = vrcp.f32 %v566_v28 }
 0x166   : >>> { %v1696_v34 = vpop.eup %1695 }
 0x167   : >>> { %v574_v35 = vsel %vm573_vm11, 0.0, %v1696_v34 }
 0x168   : >>> { %v575_v36 = vmul.f32 %v574_v35, %v574_v35  ;;  %v579_v37 = vmul.f32 %v574_v35, %v547_v12 }
 0x16a   : >>> { %v576_v38 = vadd.f32 1.0, %v575_v36  ;;  %v580_v39 = vsub.f32 %v545_v14, %v579_v37  ;;  %v582_v40 = vadd.f32 %v579_v37, %v549_v15 }
 0x16c   : >>> { %1697 = vrsqrt.f32 %v576_v38  ;;  %584 = vst [vmem:[%s583_s14] sm:$0xff] %v580_v39  ;;  %586 = vst [vmem:[%s585_s26] sm:$0xff] %v582_v40  ;;  %s1968_s14 = smov [#allocation12]  ;;  %s619_s26 = smov [#allocation24] }
 0x16d   : >>> { %v629_v49 = vld [vmem:[%s1968_s14] sm:$0x1f] }
 0x179   : >>> { %v1698_v41 = vpop.eup %1697 }
 0x17a   : >>> { %588 = vst [vmem:[%s587_s29] sm:$0xff] %v1698_v41  ;;  %v578_v42 = vmul.f32 %v1698_v41, %v574_v35  ;;  %s1970_s29 = smov [#allocation13] }
 0x17b   : >>> { %v630_v50 = vld [vmem:[%s1970_s29] sm:$0x1f] }
 0x17c   : >>> { %590 = vst [vmem:[%s589_s20] sm:$0xff] %v578_v42  ;;  %s1972_s20 = smov [#allocation14] }
 0x17d   : >>> { %v631_v51 = vld [vmem:[%s1972_s20] sm:$0x1f] }
 0x181   : >>> { %v592_v43 = vld [vmem:[%s591_s21] ss:$0 sm:$0xff]  ;;  %s1974_s21 = smov [#allocation15] }
 0x182   : >>> { %v601_v44 = vsel %vm600_vm12, %v592_v43, 0.0  ;;  %v632_v52 = vld [vmem:[%s1974_s21] sm:$0x1f] }
 0x183   : >>> { %602 = vadd.xlane.f32.xlu0 %v601_v44  ;;  %v607_v45 = vld [vmem:[%s606_s23] ss:$0 sm:$0xff]  ;;  %s845_s23 = smov [#allocation23] }
 0x184   : >>> { %v616_v46 = vsel %vm615_vm13, %v607_v45, 0.0 }
 0x187   : >>> { %617 = vadd.xlane.f32.xlu0 %v616_v46 }
 0x20c   : >>> { %v603_v47 = vpop.xlane.xlu0 %602 }
 0x20d   : >>> { %605 = vst [vmem:[%s604_s25] sm:$0xff] %v603_v47  ;;  %s623_s25 = smov [#allocation24] }
 0x210   : >>> { %v618_v48 = vpop.xlane.xlu0 %617 }
 0x211   : >>> { %620 = vst [vmem:[%s619_s26] sm:$0xff] %v618_v48  ;;  %s2004_s26 = smov [#allocation14] }
 0x214   : >>> { %v622_v56 = vld [vmem:[%s621_s17] sm:$0xff]  ;;  %s651_s17 = smov [#allocation22] }
 0x215   : >>> { %v846_v58 = vld [vmem:[%s845_s23] sm:$0xff]  ;;  %v633_v59 = vmul.f32 %v629_v49, %v622_v56  ;;  %v636_v60 = vmul.f32 %v630_v50, %v622_v56  ;;  %v640_v61 = vmul.f32 %v631_v51, %v622_v56  ;;  %v643_v62 = vmul.f32 %v632_v52, %v622_v56  ;;  %s2006_s23 = smov [#allocation15] }
 0x216   : >>> { %v857_v63 = vmul.f32 %v853_v53, %v846_v58  ;;  %v860_v0 = vmul.f32 %v854_v54, %v846_v58  ;;  %v864_v1 = vmul.f32 %v855_v55, %v846_v58  ;;  %v867_v2 = vmul.f32 %v856_v57, %v846_v58  ;;  %v652_v24 = vld [vmem:[%s651_s17] ss:$0 sm:$0xff]  ;;  %s677_s17 = smov [#allocation12] }
 0x218   : >>> { %v624_v3 = vld [vmem:[%s623_s25] sm:$0xff]  ;;  %s2008_s25 = smov [#allocation12] }
 0x219   : >>> { %v848_v4 = vld [vmem:[%s847_s9] sm:$0xff]  ;;  %v634_v7 = vmul.f32 %v631_v51, %v624_v3  ;;  %v637_v8 = vmul.f32 %v632_v52, %v624_v3  ;;  %v639_v9 = vmul.f32 %v629_v49, %v624_v3  ;;  %v642_v10 = vmul.f32 %v630_v50, %v624_v3  ;;  %s649_s9 = smov [#allocation21] }
 0x21a   : >>> { %v858_v11 = vmul.f32 %v855_v55, %v848_v4  ;;  %v861_v12 = vmul.f32 %v856_v57, %v848_v4  ;;  %v863_v13 = vmul.f32 %v853_v53, %v848_v4  ;;  %v866_v14 = vmul.f32 %v854_v54, %v848_v4  ;;  %v650_v23 = vld [vmem:[%s649_s9] ss:$0 sm:$0xff]  ;;  %s678_s9 = smov [#allocation19] }
 0x21b   : >>> { %v635_v15 = vsub.f32 %v633_v59, %v634_v7  ;;  %v638_v16 = vsub.f32 %v636_v60, %v637_v8  ;;  %v641_v17 = vadd.f32 %v640_v61, %v639_v9  ;;  %v644_v18 = vadd.f32 %v643_v62, %v642_v10  ;;  %v685_v59 = vld [vmem:[%s678_s9] ss:$0 sm:$0xff]  ;;  %s797_s9 = smov [#allocation12] }
 0x21c   : >>> { %v859_v19 = vsub.f32 %v857_v63, %v858_v11  ;;  %v862_v20 = vsub.f32 %v860_v0, %v861_v12  ;;  %v865_v21 = vadd.f32 %v864_v1, %v863_v13  ;;  %v868_v22 = vadd.f32 %v867_v2, %v866_v14 }
 0x21d   : >>> { %646 = vst [vmem:[%s1970_s29] sm:$0x1f] %v638_v16  ;;  %648 = vst [vmem:[%s1974_s21] sm:$0x1f] %v644_v18  ;;  %s719_s29 = smov [#allocation20]  ;;  %s718_s21 = smov [#allocation15] }
 0x21e   : >>> { %645 = vst [vmem:[%s1968_s14] sm:$0x1f] %v635_v15  ;;  %647 = vst [vmem:[%s1972_s20] sm:$0x1f] %v641_v17  ;;  %s2021_s14 = smov [#allocation13]  ;;  %s705_s20 = smov [#allocation14]  ;;  %v726_v55 = vld [vmem:[%s719_s29] ss:$0 sm:$0xff] }
 0x21f   : >>> { %869 = vst [vmem:[%s1977_s24] sm:$0x1f] %v859_v19  ;;  %870 = vst [vmem:[%s1980_s30] sm:$0x1f] %v862_v20  ;;  %s2011_s24 = smov %s1910_s24  ;;  %s2019_s30 = smov %s1913_s30 }
 0x220   : >>> { %871 = vst [vmem:[%s1983_s28] sm:$0x1f] %v865_v21  ;;  %872 = vst [vmem:[%s1988_s16] sm:$0x1f] %v868_v22  ;;  %s2014_s28 = smov %s1916_s28  ;;  %s2024_s16 = smov %s1919_s16 }
 0x221   : >>> { %s734_s29 = smov [#allocation13] }
 0x224   : >>> { %v660_v26 = vld [vmem:[%s2006_s23] sm:$0x1f] }
 0x225   : >>> { %v659_v25 = vld [vmem:[%s2004_s26] sm:$0x1f]  ;;  %v668_v32 = vmul.f32 %v660_v26, %v652_v24  ;;  %v671_v38 = vmul.f32 %v660_v26, %v650_v23 }
 0x226   : >>> { %v657_v27 = vld [vmem:[%s2008_s25] sm:$0x1f]  ;;  %v667_v31 = vmul.f32 %v659_v25, %v650_v23  ;;  %v670_v33 = vmul.f32 %v659_v25, %v652_v24 }
 0x227   : >>> { %v875_v28 = vld [vmem:[%s2011_s24] ss:$0 sm:$0xff]  ;;  %v1583_v30 = vld [vmem:[%s2011_s24 + $0x4] ss:$0 sm:$0xff]  ;;  %v661_v44 = vmul.f32 %v657_v27, %v650_v23  ;;  %v664_v45 = vmul.f32 %v657_v27, %v652_v24 }
 0x228   : >>> { %v1582_v29 = vld [vmem:[%s2011_s24 - $0x1] sm:$0x1e]  ;;  %v1587_v41 = vld [vmem:[%s2019_s30 + $0x4] ss:$0 sm:$0xff]  ;;  %v669_v43 = vsub.f32 %v667_v31, %v668_v32  ;;  %v672_v49 = vadd.f32 %v671_v38, %v670_v33 }
 0x229   : >>> { %v882_v34 = vsel %vm805_vm14, %v875_v28, %v1582_v29  ;;  %v886_v35 = vld [vmem:[%s2014_s28] ss:$0 sm:$0xff]  ;;  %v1585_v36 = vld [vmem:[%s2014_s28 + $0x1] sm:$0xf] }
 0x22a   : >>> { %v899_v37 = vld [vmem:[%s2019_s30] ss:$0 sm:$0xff]  ;;  %885 = vst [vmem:[%s2011_s24] sm:$0x1f] %v882_v34  ;;  %v894_v39 = vsel %vm817_vm15, %v1583_v30, %v1585_v36  ;;  %v1589_v47 = vld [vmem:[%s2024_s16 + $0x1] sm:$0xf]  ;;  %675 = vst [vmem:[%s2004_s26] sm:$0x1f] %v669_v43 }
 0x22b   : >>> { %v1586_v40 = vld [vmem:[%s2019_s30 - $0x1] sm:$0x1e]  ;;  %1584 = vst [vmem:[%s2011_s24 + $0x1] sm:$0x1] %v886_v35  ;;  %896 = vst [vmem:[%s2014_s28] sm:$0x1f] %v894_v39  ;;  %v918_v50 = vsel %vm817_vm15, %v1587_v41, %v1589_v47  ;;  %s692_s26 = smov [#allocation13] }
 0x22c   : >>> { %v910_v42 = vld [vmem:[%s2024_s16] ss:$0 sm:$0xff]  ;;  %v906_v46 = vsel %vm805_vm14, %v899_v37, %v1586_v40  ;;  %676 = vst [vmem:[%s2006_s23] sm:$0x1f] %v672_v49  ;;  %s2066_s23 = smov [#allocation14] }
 0x22d   : >>> { %v658_v48 = vld [vmem:[%s2021_s14] sm:$0x1f]  ;;  %909 = vst [vmem:[%s2019_s30] sm:$0x1f] %v906_v46  ;;  %920 = vst [vmem:[%s2024_s16] sm:$0x1f] %v918_v50 }
 0x22e   : >>> { %v662_v51 = vmul.f32 %v658_v48, %v652_v24  ;;  %v665_v52 = vmul.f32 %v658_v48, %v650_v23  ;;  %1588 = vst [vmem:[%s2019_s30 + $0x1] sm:$0x1] %v910_v42 }
 0x230   : >>> { %v663_v53 = vsub.f32 %v661_v44, %v662_v51  ;;  %v666_v54 = vadd.f32 %v665_v52, %v664_v45 }
 0x231   : >>> { %v712_v56 = vld [vmem:[%s705_s20] sm:$0x1f] }
 0x232   : >>> { %673 = vst [vmem:[%s2008_s25] sm:$0x1f] %v663_v53  ;;  %674 = vst [vmem:[%s2021_s14] sm:$0x1f] %v666_v54  ;;  %v716_v57 = vsel %vm715_vm0, 0.0, %v712_v56  ;;  %s1772_s25 = smov 1   ;;  %s733_s14 = smov [#allocation12] }
 0x233   : >>> { %v727_v58 = vld [vmem:[%s718_s21] sm:$0x1f]  ;;  %717 = vst [vmem:[%s705_s20] sm:$0x1f] %v716_v57  ;;  %s1773_s20 = smov 127  }
 0x234   : >>> { %v731_v60 = vsel %vm730_vm1, %v726_v55, %v727_v58 }
 0x235   : >>> { %732 = vst [vmem:[%s718_s21] sm:$0x1f] %v731_v60  ;;  %s2069_s21 = smov [#allocation15] }
 0x239   : >>> { %v686_v61 = vld [vmem:[%s677_s17] sm:$0x1f] }
 0x23a   : >>> { %v699_v62 = vld [vmem:[%s692_s26] sm:$0x1f]  ;;  %v690_v63 = vsel %vm689_vm3, %v685_v59, %v686_v61 }
 0x23b   : >>> { %v703_v0 = vsel %vm702_vm4, 0.0, %v699_v62  ;;  %691 = vst [vmem:[%s677_s17] sm:$0x1f] %v690_v63  ;;  %v771_v1 = vld [vmem:[%s2066_s23] sm:$0x1f]  ;;  %s821_s17 = smov [#allocation13] }
 0x23c   : >>> { %704 = vst [vmem:[%s692_s26] sm:$0x1f] %v703_v0  ;;  %772 = vrot.lane.b32.xlu0 %v771_v1, %s1772_s25  ;;  %v767_v7 = vld [vmem:[%s2069_s21] sm:$0x1f]  ;;  %s798_s26 = smov [#allocation14] }
 0x23d   : >>> { %v788_v8 = vld [vmem:[%s2069_s21] sm:$0x1f] }
 0x23e   : >>> { %v770_v26 = vld [vmem:[%s2066_s23] sm:$0x1f] }
 0x242   : >>> { %v739_v2 = vld [vmem:[%s733_s14] sm:$0x1f] }
 0x243   : >>> { %740 = vrot.lane.b32.xlu1 %v739_v2, %s1772_s25  ;;  %v735_v3 = vld [vmem:[%s734_s29] sm:$0x1f] }
 0x244   : >>> { %v756_v4 = vld [vmem:[%s734_s29] sm:$0x1f] }
 0x245   : >>> { %v738_v14 = vld [vmem:[%s733_s14] sm:$0x1f] }
 0x247   : >>> { %736 = vrot.lane.b32.xlu1 %v735_v3, %s1772_s25 }
 0x24b   : >>> { %757 = vrot.lane.b32.xlu1 %v756_v4, %s1773_s20 }
 0x24f   : >>> { %768 = vrot.lane.b32.xlu1 %v767_v7, %s1772_s25  ;;  %s822_s25 = smov [#allocation15] }
 0x253   : >>> { %789 = vrot.lane.b32.xlu1 %v788_v8, %s1773_s20  ;;  %s422_s20 = smov (%p478_p11), [#allocation14] }
 0x2ae   : >>> { %v773_v16 = vpop.permute.xlu0 %772 }
 0x2af   : >>> { %v777_v18 = vsel %vm744_vm5, %v771_v1, %v773_v16 }
 0x2b5   : >>> { %v741_v9 = vpop.permute.xlu1 %740 }
 0x2b6   : >>> { %v745_v10 = vsel %vm744_vm5, %v739_v2, %v741_v9 }
 0x2b9   : >>> { %v737_v11 = vpop.permute.xlu1 %736 }
 0x2ba   : >>> { %v749_v12 = vsel %vm748_vm6, %v737_v11, %v745_v10 }
 0x2bb   : >>> { %v755_v13 = vsel %vm1427_vm2, %v749_v12, 0.0 }
 0x2bc   : >>> { %763 = vst [vmem:[%s733_s14] sm:$0x1f] %v755_v13  ;;  %s386_s14 = smov (%p478_p11), [#allocation12] }
 0x2bd   : >>> { %v758_v15 = vpop.permute.xlu1 %757 }
 0x2be   : >>> { %v762_v17 = vsel %vm761_vm7, %v738_v14, %v758_v15 }
 0x2bf   : >>> { %764 = vst [vmem:[%s734_s29] sm:$0x1f] %v762_v17  ;;  %s405_s29 = smov (%p478_p11), [#allocation13] }
 0x2c1   : >>> { %v769_v19 = vpop.permute.xlu1 %768 }
 0x2c2   : >>> { %v781_v20 = vsel %vm748_vm6, %v769_v19, %v777_v18 }
 0x2c3   : >>> { %v799_v21 = vld [vmem:[%s797_s9] ss:$0 sm:$0xff]  ;;  %v1575_v23 = vld [vmem:[%s797_s9 + $0x4] ss:$0 sm:$0xff]  ;;  %v787_v25 = vsel %vm1427_vm2, %v781_v20, 0.0 }
 0x2c4   : >>> { %v1574_v22 = vld [vmem:[%s797_s9 - $0x1] sm:$0x1e]  ;;  %795 = vst [vmem:[%s2066_s23] sm:$0x1f] %v787_v25  ;;  %s921_s23 = sadd.s32 (%p478_p11), 1, %s1765_s27  }
 0x2c5   : >>> { %v806_v24 = vsel %vm805_vm14, %v799_v21, %v1574_v22  ;;  %v790_v27 = vpop.permute.xlu1 %789  ;;  %p474_p12 = scmp.ge.s32.totalorder (%p478_p11), %s921_s23, 15  ;;  %s2215_s27 = smov (%p478_p11), %s921_s23 }
 0x2c6   : >>> { %809 = vst [vmem:[%s797_s9] sm:$0x1f] %v806_v24  ;;  %v823_v28 = vld [vmem:[%s821_s17] ss:$0 sm:$0xff]  ;;  %v1579_v30 = vld [vmem:[%s821_s17 + $0x4] ss:$0 sm:$0xff]  ;;  %v794_v31 = vsel %vm761_vm7, %v770_v26, %v790_v27 }
 0x2c7   : >>> { %v1578_v29 = vld [vmem:[%s821_s17 - $0x1] sm:$0x1e]  ;;  %796 = vst [vmem:[%s2069_s21] sm:$0x1f] %v794_v31  ;;  %s439_s21 = smov (%p478_p11), [#allocation15] }
 0x2c8   : >>> { %v830_v32 = vsel %vm805_vm14, %v823_v28, %v1578_v29 }
 0x2c9   : >>> { %833 = vst [vmem:[%s821_s17] sm:$0x1f] %v830_v32 }
 0x2cb   : >>> { %v810_v33 = vld [vmem:[%s798_s26] ss:$0 sm:$0xff]  ;;  %v1577_v34 = vld [vmem:[%s798_s26 + $0x1] sm:$0xf] }
 0x2cc   : >>> { %1576 = vst [vmem:[%s797_s9 + $0x1] sm:$0x1] %v810_v33  ;;  %v818_v35 = vsel %vm817_vm15, %v1575_v23, %v1577_v34 }
 0x2cd   : >>> { %820 = vst [vmem:[%s798_s26] sm:$0x1f] %v818_v35 }
 0x2ce   : >>> { %v834_v36 = vld [vmem:[%s822_s25] ss:$0 sm:$0xff]  ;;  %v1581_v37 = vld [vmem:[%s822_s25 + $0x1] sm:$0xf] }
 0x2cf   : >>> { %1580 = vst [vmem:[%s821_s17 + $0x1] sm:$0x1] %v834_v36  ;;  %v842_v38 = vsel %vm817_vm15, %v1579_v30, %v1581_v37 }
 0x2d0   : >>> { %844 = vst [vmem:[%s822_s25] sm:$0x1f] %v842_v38  ;;  %480 = sbr.rel (!%p478_p11) target bundleno = 276 (0x114), region = 494 }
 0x2d3   : >> { %v392_v39 = vld [vmem:[%s386_s14] sm:$0x1f] (%p478_p11) }
 0x2d4   : >> { %v393_v41 = vsel (%p478_p11), %vm1427_vm2, %v392_v39, 0.0  ;;  %v428_v43 = vld [vmem:[%s422_s20] sm:$0x1f] (%p478_p11) }
 0x2d5   : >> { %v394_v45 = vmul.f32 %v393_v41, %v393_v41  ;;  %v429_v47 = vsel %vm1427_vm2, %v428_v43, 0.0 }
 0x2d6   : >> { %v411_v40 = vld [vmem:[%s405_s29] sm:$0x1f]  ;;  %v430_v49 = vmul.f32 %v429_v47, %v429_v47 }
 0x2d7   : >> { %v412_v42 = vsel %vm1427_vm2, %v411_v40, 0.0  ;;  %v445_v44 = vld [vmem:[%s439_s21] sm:$0x1f]  ;;  %v398_v52 = vsel %vm397_vm8, 0.0, %v394_v45 }
 0x2d8   : >> { %v413_v46 = vmul.f32 %v412_v42, %v412_v42  ;;  %v446_v48 = vsel %vm1427_vm2, %v445_v44, 0.0 }
 0x2d9   : >> { %v447_v51 = vmul.f32 %v446_v48, %v446_v48 }
 0x2da   : >> { %v415_v50 = vadd.f32 %v413_v46, %v394_v45  ;;  %v414_v53 = vadd.f32 %v413_v46, %v398_v52 }
 0x2db   : >> { %v451_v56 = vsel %vm450_vm9, 0.0, %v447_v51 }
 0x2dc   : >> { %v432_v54 = vadd.f32 %v430_v49, %v415_v50  ;;  %v431_v55 = vadd.f32 %v430_v49, %v414_v53 }
 0x2de   : >> { %v453_v57 = vadd.f32 %v447_v51, %v432_v54  ;;  %v452_v58 = vadd.f32 %v451_v56, %v431_v55 }
 0x2e0   : >> { %454 = vadd.xlane.f32.xlu0 %v453_v57 }
 0x2e4   : >> { %462 = vadd.xlane.f32.xlu0 %v452_v58 }
 0x369   : >> { %v455_v59 = vpop.xlane.xlu0 %454 }
 0x36a   : >> { %v456_v60 = vrot.slane %v455_v59, 4 }
 0x36c   : >> { %v457_v61 = vadd.f32 %v456_v60, %v455_v59 }
 0x36d   : >> { %v463_v62 = vpop.xlane.xlu0 %462 }
 0x36e   : >> { %v458_v63 = vrot.slane %v457_v61, 2  ;;  %v464_v0 = vrot.slane %v463_v62, 4 }
 0x370   : >> { %v465_v1 = vadd.f32 %v464_v0, %v463_v62  ;;  %v459_v2 = vadd.f32 %v458_v63, %v457_v61 }
 0x372   : >> { %v466_v3 = vrot.slane %v465_v1, 2  ;;  %v460_v7 = vrot.slane %v459_v2, 1 }
 0x374   : >> { %v467_v4 = vadd.f32 %v466_v3, %v465_v1  ;;  %v461_v10 = vadd.f32 %v460_v7, %v459_v2 }
 0x376   : >> { %v468_v8 = vrot.slane %v467_v4, 1 }
 0x378   : >> { %v469_v9 = vadd.f32 %v468_v8, %v467_v4 }
 0x37a   : >> { %1612 = vpush %v469_v9 }
 0x37b   : >> { %1614 = vpush %v461_v10 }
 0x3ab   : >> { %s1613_s18 = spop %1612 }
 0x3ac   : >> { %s1615_s9 = spop %1614 }
 0x3ad   : >> { %s472_s17 = smul.f32 1e-10, %s1615_s9 }
 0x3af   : >> { %p473_p13 = scmp.le.f32.partialorder %s1613_s18, %s472_s17 }
 0x3b1   : >> { %p475_p0 = por %p474_p12, %p473_p13 }
 0x3b3   : > { %923 = sbr.rel (!%p475_p0) target bundleno = 275 (0x113), region = 505 }
 0x3b8 PF: > { %s928_s26 = smov [#allocation12]  ;;  %v932_v5 = vmov %v1906_v5  ;;  %v935_v6 = vmov %v1908_v6  ;;  %s948_s25 = smov [#allocation15] }
 0x3b9   : > { %v952_v5 = vmov %v1906_v5  ;;  %v955_v6 = vmov %v1908_v6  ;;  %v936_v11 = vld [vmem:[%s928_s26] sm:$0x1f]  ;;  %vm939_vm10 = vcmp.eq.s32.totalorder %v935_v6, %v932_v5  ;;  %s924_s27 = sand.u32 7, %s1745_s11   ;;  %s2216_s29 = scalar_lea.vmem [#allocation7], %s1904_s19 }
 0x3ba   : > { %vm959_vm11 = vcmp.eq.s32.totalorder %v955_v6, %v952_v5  ;;  %v940_v12 = vsel %vm939_vm10, %v936_v11, 0.0  ;;  %v956_v14 = vld [vmem:[%s948_s25] sm:$0x1f]  ;;  %s925_s23 = scalar_lea.vmem [#allocation4], %s924_s27  ;;  %s927_s14 = scalar_lea.vmem [#allocation6], %s924_s27 }
 0x3bb   : > { %v941_v13 = vrot.slane %v940_v12, 4  ;;  %v960_v15 = vsel %vm959_vm11, %v956_v14, 0.0  ;;  %s929_s23 = smov %s925_s23  ;;  %s949_s14 = smov %s927_s14 }
 0x3bc   : > { %v961_v17 = vrot.slane %v960_v15, 4  ;;  %s1011_s20 = sshrl.u32 (%p1873_p4), %s1745_s11, 3 }
 0x3bd   : > { %v942_v16 = vadd.f32 %v941_v13, %v940_v12  ;;  %s1012_s21 = sadd.s32 (%p1873_p4), %s1749_s12, %s1011_s20 }
 0x3be   : > { %v962_v19 = vadd.f32 %v961_v17, %v960_v15  ;;  %s1596_s18 = sshll.u32 (%p1873_p4), %s1012_s21, 1 }
 0x3bf   : > { %v943_v18 = vrot.slane %v942_v16, 2  ;;  %s1014_s26 = scalar_lea.vmem (%p1873_p4), %s2196_s4, %s1596_s18 }
 0x3c0   : > { %v963_v21 = vrot.slane %v962_v19, 2 }
 0x3c1   : > { %v944_v20 = vadd.f32 %v943_v18, %v942_v16 }
 0x3c2   : > { %v964_v23 = vadd.f32 %v963_v21, %v962_v19 }
 0x3c3   : > { %v945_v22 = vrot.slane %v944_v20, 1 }
 0x3c4   : > { %v965_v5 = vrot.slane %v964_v23, 1 }
 0x3c5   : > { %v946_v24 = vadd.f32 %v945_v22, %v944_v20 }
 0x3c6   : > { %v966_v6 = vadd.f32 %v965_v5, %v964_v23 }
 0x3c7   : > { %947 = vst [vmem:[%s929_s23] sm:$0x1] %v946_v24 }
 0x3c8   : > { %967 = vst [vmem:[%s949_s14] sm:$0x1] %v966_v6 }
 0x3cc   : > { %1010 = sbr.rel (!%p1873_p4) target bundleno = 984 (0x3d8), region = 174 }
 0x3ce   : > { %v972_v25 = vld [vmem:[#allocation4] sm:$0x3] }
 0x3cf   : > { %975 = vst [vmem:[%s311_s10] sm:$0x3] %v972_v25  ;;  %v980_v26 = vld [vmem:[#allocation6] sm:$0x3] }
 0x3d0   : > { %983 = vst [vmem:[%s2216_s29] sm:$0x3] %v980_v26 }
 0x3d6   : > { %v1031_v27 = vld [vmem:[%s311_s10] sm:$0x3] }
 0x3d7   : > { %1032 = vst [vmem:[%s1014_s26] sm:$0x3] %v1031_v27 }
 0x3d8 PF: > { %1050 = sbr.rel (!%p1873_p4) target bundleno = 992 (0x3e0), region = 208  ;;  %s1051_s25 = sshrl.u32 (%p1873_p4), %s1745_s11, 3 }
 0x3d9   : > { %s1052_s27 = sadd.s32 (%p1873_p4), %s1749_s12, %s1051_s25  ;;  %s2217_s23 = scalar_lea.vmem (%p1873_p4), [#allocation7], %s1904_s19 }
 0x3da   : > { %s1597_s14 = sshll.u32 (%p1873_p4), %s1052_s27, 1 }
 0x3db   : > { %s1054_s20 = scalar_lea.vmem (%p1873_p4), %s2197_s5, %s1597_s14 }
 0x3de   : > { %v1071_v28 = vld [vmem:[%s2217_s23] sm:$0x3] }
 0x3df   : > { %1072 = vst [vmem:[%s1054_s20] sm:$0x3] %v1071_v28 }
 0x3e0 PF: > { %s1598_s22 = sshll.u32 %s1749_s12, 1  ;;  %v1120_v29 = vld [vmem:[%s1910_s24] sm:$0xff]  ;;  %v1157_v30 = vld [vmem:[%s1913_s30] sm:$0xff]  ;;  %s2218_s30 = sld [smem:[#allocation30_spill]] }
 0x3e1   : > { %s1089_s21 = sadd.s32 %s1745_s11, %s1598_s22  ;;  %v1194_v31 = vld [vmem:[%s1916_s28] sm:$0xff]  ;;  %v1231_v32 = vld [vmem:[%s1919_s16] sm:$0xff] }
 0x3e2   : > { %s1599_s18 = sshll.u32 %s1089_s21, 3 }
 0x3e3   : > { %s1091_s17 = scalar_lea.vmem %s2198_s6, %s1599_s18  ;;  %s1128_s27 = scalar_lea.vmem %s2199_s7, %s1599_s18 }
 0x3e4   : > { %1121 = vst [vmem:[%s1091_s17] sm:$0xff] %v1120_v29  ;;  %1158 = vst [vmem:[%s1128_s27] sm:$0xff] %v1157_v30  ;;  %s1165_s12 = scalar_lea.vmem %s2200_s8, %s1599_s18 }
 0x3e5   : > { %1195 = vst [vmem:[%s1165_s12] sm:$0xff] %v1194_v31 }
 0x3e6   : > { %s1202_s29 = scalar_lea.vmem %s2218_s30, %s1599_s18 }
 0x3e7   : > { %1232 = vst [vmem:[%s1202_s29] sm:$0xff] %v1231_v32 }
 0x3e8 PF: > { %s16_s15 = sadd.s32 1, %s1761_s15   ;;  %s2219_s30 = sld [smem:[#allocation25_spill]] }
 0x3e9   : > { %p13_p1 = scmp.ge.s32.totalorder %s16_s15, 8   ;;  %s2220_s10 = sld [smem:[#allocation29_spill]] }
 0x3ea   : > { %s2221_s12 = sld [smem:[#allocation26_spill]]  ;;  %s2224_s11 = smov %s1753_s13 }
 0x3eb   : > { %s2222_s28 = sld [smem:[#allocation27_spill]] }
 0x3ec   : > { %s2223_s14 = sld [smem:[#allocation28_spill]] }
 0x3ed   :  { %15 = sbr.rel (!%p13_p1) target bundleno = 6 (0x6), region = 516 }
 0x3f1   : > { %s2225_s13 = smov %s2222_s28 }

// kernel: _homography_loss_impl.2
= control target key start
LH: loop header
LB: loop body
LE: loop exit
PB: predicated region body
PF: predicated region fallthrough
CT: control target
= control target key end

     0   :  { %v357_v37 = vmov 683565275   ;;  %v358_v39 = vmov 2475754826   ;;  %v359_v41 = vmov 2131351028   ;;  %s482_s0 = inlined_call_operand.vmem [shape: f32[18,8,128], index: 0, kind: input, shape index: {}]   ;;  %s483_s1 = inlined_call_operand.vmem [shape: f32[10,8,128], index: 1, kind: output, shape index: {}]  }
   0x1   :  { %v8_v0 = vld [vmem:[%s482_s0] sm:$0xff]  ;;  %v308_v1 = vld [vmem:[%s482_s0 + $0x10] sm:$0xff]  ;;  %v309_v2 = vld [vmem:[%s482_s0 + $0x8] sm:$0xff]  ;;  %v360_v43 = vmov 2102212464  }
   0x2   :  { %v11_v3 = vadd.f32 %v308_v1, %v8_v0  ;;  %v310_v4 = vld [vmem:[%s482_s0 + $0x18] sm:$0xff]  ;;  %v390_v5 = vld [vmem:[%s482_s0 + $0x20] sm:$0xff]  ;;  %v312_v7 = vld [vmem:[%s482_s0 + $0x28] sm:$0xff]  ;;  %v361_v45 = vmov 920167782  }
   0x3   :  { %v17_v6 = vadd.f32 %v310_v4, %v309_v2  ;;  %v315_v8 = vld [vmem:[%s482_s0 + $0x58] sm:$0xff]  ;;  %334 = vst [vmem:[%s483_s1 + $0x28] sm:$0xff] %v390_v5  ;;  %v313_v10 = vld [vmem:[%s482_s0 + $0x30] sm:$0xff]  ;;  %v408_v12 = vld [vmem:[%s482_s0 + $0x80] sm:$0xff]  ;;  %v362_v52 = vmov 1326507024  }
   0x4   :  { %v12_v9 = vmul.f32 4.0, %v11_v3  ;;  %351 = vrcp.f32 %v315_v8  ;;  %v314_v15 = vld [vmem:[%s482_s0 + $0x38] sm:$0xff]  ;;  %v65_v16 = vand.u32 2139095040, %v408_v12  ;;  %v316_v18 = vld [vmem:[%s482_s0 + $0x60] sm:$0xff]  ;;  %v62_v21 = vand.u32 2147483647, %v408_v12 }
   0x5   :  { %v18_v11 = vmul.f32 4.0, %v17_v6  ;;  %v317_v25 = vld [vmem:[%s482_s0 + $0x68] sm:$0xff]  ;;  %vm64_vm7 = vcmp.lt.s32.totalorder %v408_v12, 0  ;;  %vm154_vm15 = vweird.f32 %v408_v12 }
   0x6   :  { %v23_v13 = vmul.f32 %v312_v7, %v12_v9  ;;  %v66_v19 = vshrl.u32 %v65_v16, 23  ;;  %v69_v27 = vand.u32 8388607, %v62_v21  ;;  %vm63_vm8 = vcmp.le.f32.partialorder %v62_v21, 0.7853982  ;;  %v319_v21 = vld [vmem:[%s482_s0 + $0x70] sm:$0xff] }
   0x7   :  { %v26_v14 = vmul.f32 %v313_v10, %v18_v11 }
   0x8   :  { %v322_v22 = vadd.s32 4294967169, %v66_v19  ;;  %v70_v33 = vor.u32 8388608, %v69_v27 }
   0x9   :  { %v27_v17 = vadd.f32 %v26_v14, %v23_v13 }
   0xa   :  { %v72_v24 = vadd.s32 1, %v322_v22  ;;  %v110_v54 = vshll.u32 %v70_v33, 8 }
   0xb   :  { %v30_v20 = vadd.f32 %v314_v15, %v27_v17 }
   0xc   :  { %vm73_vm0 = vcmp.gt.s32.totalorder %v72_v24, 0 }
   0xd   :  { %v39_v23 = vsub.f32 %v30_v20, %v316_v18  ;;  %v74_v29 = vsel %vm73_vm0, %v72_v24, 0 }
   0xe   :  { %v76_v32 = vand.u32 31, %v74_v29  ;;  %v75_v34 = vshrl.u32 %v74_v29, 5 }
   0xf   :  { %v40_v26 = vmul.f32 %v390_v5, %v39_v23 }
  0x10   :  { %v77_v36 = vsub.s32 32, %v76_v32  ;;  %v79_v38 = vshll.u32 %v357_v37, %v76_v32  ;;  %v82_v40 = vshll.u32 %v358_v39, %v76_v32  ;;  %v85_v42 = vshll.u32 %v359_v41, %v76_v32 }
  0x11   :  { %v352_v28 = vpop.eup %351  ;;  %v88_v44 = vshll.u32 %v360_v43, %v76_v32  ;;  %v91_v46 = vshll.u32 %v361_v45, %v76_v32  ;;  %vm94_vm1 = vcmp.lt.s32.totalorder %v75_v34, 1  ;;  %vm97_vm2 = vcmp.lt.s32.totalorder %v75_v34, 4 }
  0x12   :  { %v41_v30 = vmul.f32 %v352_v28, %v40_v26  ;;  %v42_v31 = vmul.f32 %v352_v28, %v317_v25  ;;  %v78_v47 = vshrl.u32 %v357_v37, %v77_v36  ;;  %v80_v48 = vshrl.u32 %v358_v39, %v77_v36 }
  0x13   :  { %v83_v49 = vshrl.u32 %v359_v41, %v77_v36  ;;  %v86_v50 = vshrl.u32 %v360_v43, %v77_v36  ;;  %v89_v51 = vshrl.u32 %v361_v45, %v77_v36  ;;  %v92_v53 = vshrl.u32 %v362_v52, %v77_v36 }
  0x14   :  { %v424_v35 = vsub.f32 %v41_v30, %v42_v31  ;;  %v81_v55 = vor.u32 %v80_v48, %v79_v38  ;;  %vm95_vm3 = vcmp.lt.s32.totalorder %v75_v34, 2  ;;  %vm96_vm4 = vcmp.lt.s32.totalorder %v75_v34, 3 }
  0x15   :  { %v84_v56 = vor.u32 %v83_v49, %v82_v40  ;;  %v87_v57 = vor.u32 %v86_v50, %v85_v42  ;;  %v90_v58 = vor.u32 %v89_v51, %v88_v44  ;;  %v93_v59 = vor.u32 %v92_v53, %v91_v46  ;;  %v318_v46 = vld [vmem:[%s482_s0 + $0x88] sm:$0xff]  ;;  %v320_v53 = vld [vmem:[%s482_s0 + $0x78] sm:$0xff] }
  0x16   :  { %273 = vst [vmem:[%s483_s1] sm:$0xff] %v424_v35  ;;  %v98_v60 = vsel %vm94_vm1, %v78_v47, %v81_v55  ;;  %vm47_vm9 = vcmp.lt.f32.partialorder %v318_v46, 1.5  ;;  %vm46_vm10 = vcmp.lt.f32.partialorder %v318_v46, 0.5  ;;  %v363_v49 = vmov 0.59706366  }
  0x17   :  { %v99_v61 = vsel %vm97_vm2, %v87_v57, 2102212464  ;;  %v102_v62 = vsel %vm94_vm1, %v81_v55, %v84_v56  ;;  %v106_v63 = vsel %vm94_vm1, %v84_v56, %v87_v57  ;;  %v103_v1 = vsel %vm97_vm2, %v90_v58, 920167782 }
  0x18   :  { %v100_v0 = vsel %vm96_vm4, %v84_v56, %v99_v61  ;;  %v107_v2 = vsel %vm97_vm2, %v93_v59, 1326507024  ;;  %v104_v3 = vsel %vm96_vm4, %v87_v57, %v103_v1  ;;  %v48_v50 = vsel %vm47_vm9, 1.6285675, %v363_v49 }
  0x19   :  { %v108_v4 = vsel %vm96_vm4, %v90_v58, %v107_v2  ;;  %v101_v6 = vsel %vm95_vm3, %v98_v60, %v100_v0  ;;  %v105_v7 = vsel %vm95_vm3, %v102_v62, %v104_v3  ;;  %v364_v51 = vmov 1.7628239  }
  0x1a   :  { %v109_v8 = vsel %vm95_vm3, %v106_v63, %v108_v4  ;;  %v433_v11 = vmul.u32.u64.low %v110_v54, %v105_v7  ;;  %v434_v13 = vmul.u32.u64.high %v110_v54, %v105_v7, %v433_v11  ;;  %v117_v14 = vmul.u32 %v110_v54, %v101_v6 }
  0x1b   :  { %v430_v9 = vmul.u32.u64.low %v110_v54, %v109_v8  ;;  %v431_v10 = vmul.u32.u64.high %v110_v54, %v109_v8, %v430_v9  ;;  %v50_v52 = vsel %vm47_vm9, 3.8831165, %v364_v51  ;;  %v49_v54 = vsel %vm46_vm10, 0.6606862, %v48_v50 }
  0x1c   :  { %v120_v15 = vadd.s32 1, %v434_v13  ;;  %v51_v55 = vsel %vm46_vm10, 0.8442252, %v50_v52  ;;  %v54_v58 = vadd.f32 %v319_v21, %v49_v54 }
  0x1d   :  { %vm119_vm5 = vc.u32 %v431_v10, %v433_v11  ;;  %v118_v27 = vadd.s32 %v433_v11, %v431_v10  ;;  %v58_v59 = vadd.f32 %v320_v53, %v51_v55 }
  0x1e   :  { %v121_v16 = vsel %vm119_vm5, %v120_v15, %v434_v13  ;;  %v55_v0 = vmul.f32 0.5, %v54_v58 }
  0x1f   :  { %v122_v17 = vadd.s32 %v121_v16, %v117_v14  ;;  %v59_v1 = vmul.f32 0.5, %v58_v59 }
  0x21   :  { %v123_v18 = vadd.s32 536870912, %v122_v17 }
  0x23   :  { %v124_v19 = vshrl.u32 %v123_v18, 30 }
  0x25   :  { %v125_v20 = vshll.u32 %v124_v19, 30  ;;  %v148_v41 = vsub.s32 4, %v124_v19 }
  0x27   :  { %v126_v22 = vsub.s32 %v122_v17, %v125_v20  ;;  %v149_v44 = vsel %vm64_vm7, %v148_v41, %v124_v19 }
  0x28   :  { %v151_v47 = vsel %vm63_vm8, 0, %v149_v44 }
  0x29   :  { %v128_v23 = vsub.s32 0, %v126_v22  ;;  %v258_v48 = vadd.s32 3, %v151_v47  ;;  %v155_v56 = vand.u32 3, %v151_v47 }
  0x2b   :  { %v323_v24 = vmin.u32 %v128_v23, %v126_v22  ;;  %v259_v57 = vand.u32 3, %v258_v48  ;;  %vm160_vm11 = vcmp.eq.s32.totalorder %v155_v56, 2  ;;  %vm157_vm13 = vcmp.eq.s32.totalorder %v155_v56, 0 }
  0x2c   :  { %vm156_vm0 = vcmp.lt.s32.totalorder %v155_v56, 2 }
  0x2d   :  { %v130_v25 = vclz %v323_v24  ;;  %vm264_vm12 = vcmp.eq.s32.totalorder %v259_v57, 2  ;;  %vm261_vm14 = vcmp.eq.s32.totalorder %v259_v57, 0  ;;  %vm260_vm1 = vcmp.lt.s32.totalorder %v259_v57, 2 }
  0x2f   :  { %v324_v26 = vadd.s32 4294967294, %v130_v25 }
  0x31   :  { %vm325_vm6 = vcmp.lt.s32.totalorder %v324_v26, 0 }
  0x32   :  { %v133_v28 = vsel %vm325_vm6, 0, %v324_v26 }
  0x33   :  { %v134_v29 = vsub.s32 32, %v133_v28  ;;  %v135_v30 = vshll.u32 %v126_v22, %v133_v28  ;;  %v138_v31 = vsub.s32 4294967266, %v133_v28 }
  0x35   :  { %v136_v32 = vshrl.u32 %v118_v27, %v134_v29  ;;  %v139_v33 = vadd.s32 127, %v138_v31 }
  0x37   :  { %v137_v34 = vor.u32 %v136_v32, %v135_v30  ;;  %v140_v36 = vshll.u32 %v139_v33, 23 }
  0x39   :  { %v141_v37 = vor.u32 4788187, %v140_v36  ;;  %v144_v38 = vcvt.s32.f32 %v137_v34 }
  0x3b   :  { %v142_v39 = vand.u32 2147483647, %v141_v37 }
  0x3d   :  { %v145_v40 = vmul.f32 %v144_v38, %v142_v39 }
  0x3f   :  { %v146_v42 = vxor.u32 2147483648, %v145_v40 }
  0x41   :  { %v147_v43 = vsel %vm64_vm7, %v146_v42, %v145_v40 }
  0x42   :  { %v150_v45 = vsel %vm63_vm8, %v408_v12, %v147_v43 }
  0x43   :  { %353 = vcosq.f32 %v150_v45 }
  0x44   :  { %355 = vsinq.f32 %v150_v45 }
  0x50   :  { %v354_v60 = vpop.eup %353 }
  0x51   :  { %v356_v61 = vpop.eup %355  ;;  %v161_v62 = vxor.u32 2147483648, %v354_v60 }
  0x52   :  { %v158_v63 = vxor.u32 2147483648, %v356_v61 }
  0x53   :  { %v162_v2 = vsel %vm160_vm11, %v161_v62, %v356_v61  ;;  %v266_v3 = vsel %vm264_vm12, %v161_v62, %v356_v61 }
  0x54   :  { %v159_v4 = vsel %vm157_vm13, %v354_v60, %v158_v63  ;;  %v263_v6 = vsel %vm261_vm14, %v354_v60, %v158_v63 }
  0x55   :  { %v163_v7 = vsel %vm156_vm0, %v159_v4, %v162_v2  ;;  %v267_v8 = vsel %vm260_vm1, %v263_v6, %v266_v3 }
  0x56   :  { %v164_v9 = vsel %vm154_vm15, nan, %v163_v7  ;;  %v268_v10 = vsel %vm154_vm15, nan, %v267_v8 }
  0x57   :  { %v269_v11 = vmul.f32 %v164_v9, %v59_v1  ;;  %v272_v13 = vmul.f32 %v268_v10, %v55_v0  ;;  %v270_v14 = vmul.f32 %v268_v10, %v59_v1  ;;  %v271_v15 = vmul.f32 %v164_v9, %v55_v0 }
  0x59   :  { %v274_v16 = vadd.f32 %v269_v11, %v424_v35  ;;  %v281_v12 = vsub.f32 %v424_v35, %v269_v11  ;;  %v290_v17 = vsub.f32 %v390_v5, %v270_v14  ;;  %v297_v18 = vadd.f32 %v390_v5, %v270_v14 }
  0x5b   :  { %v275_v19 = vadd.f32 %v274_v16, %v272_v13  ;;  %v278_v20 = vsub.f32 %v274_v16, %v272_v13  ;;  %v282_v22 = vsub.f32 %v281_v12, %v272_v13  ;;  %v285_v23 = vadd.f32 %v281_v12, %v272_v13 }
  0x5c   :  { %v291_v24 = vadd.f32 %v290_v17, %v271_v15  ;;  %v294_v25 = vsub.f32 %v290_v17, %v271_v15  ;;  %v298_v26 = vsub.f32 %v297_v18, %v271_v15  ;;  %v301_v27 = vadd.f32 %v297_v18, %v271_v15 }
  0x5d   :  { %330 = vst [vmem:[%s483_s1 + $0x8] sm:$0xff] %v275_v19  ;;  %331 = vst [vmem:[%s483_s1 + $0x10] sm:$0xff] %v278_v20 }
  0x5e   :  { %332 = vst [vmem:[%s483_s1 + $0x18] sm:$0xff] %v282_v22  ;;  %333 = vst [vmem:[%s483_s1 + $0x20] sm:$0xff] %v285_v23 }
  0x5f   :  { %335 = vst [vmem:[%s483_s1 + $0x30] sm:$0xff] %v291_v24  ;;  %336 = vst [vmem:[%s483_s1 + $0x38] sm:$0xff] %v294_v25 }
  0x60   :  { %337 = vst [vmem:[%s483_s1 + $0x40] sm:$0xff] %v298_v26  ;;  %338 = vst [vmem:[%s483_s1 + $0x48] sm:$0xff] %v301_v27 }

// kernel: squeeze.21
= control target key start
LH: loop header
LB: loop body
LE: loop exit
PB: predicated region body
PF: predicated region fallthrough
CT: control target
= control target key end

     0   :  { %vm51_vm0 = vcmask 23552   ;;  %vm66_vm1 = vcmask 1045508   ;;  %s152_s12 = smov 122   ;;  %v153_v19 = vmov 0.0   ;;  %s198_s0 = inlined_call_operand.vmem [shape: bf16[3,2,9], index: 0, kind: input, shape index: {}]   ;;  %s199_s1 = inlined_call_operand.vmem [shape: bf16[3,2,3,3], index: 1, kind: output, shape index: {}]  }
   0x1   :  { %v141_v0 = vld [vmem:[%s198_s0 + $0x2] sm:$0x1]  ;;  %v142_v1 = vld [vmem:[%s198_s0 + $0x1] sm:$0x1]  ;;  %v46_v2 = vld [vmem:[%s198_s0] sm:$0x1] }
   0x2   :  { %v18_v3 = vunpack.c.l.bf16 %v141_v0  ;;  %v33_v4 = vunpack.c.l.bf16 %v142_v1  ;;  %v47_v5 = vunpack.c.l.bf16 %v46_v2  ;;  %s151_s0 = smov 125  }
   0x4   :  { %21 = vst [vmem:[#allocation1 + $0x10] sm:$0x3] %v18_v3  ;;  %36 = vst [vmem:[#allocation1 + $0x8] sm:$0x3] %v33_v4 }
   0x5   :  { %49 = vst [vmem:[#allocation1] sm:$0x3] %v47_v5 }
   0xb   :  { %v54_v7 = vld [vmem:[#allocation1 + $0x8] sm:$0x3]   ;;  %v65_v8 = vld [vmem:[#allocation1 + $0xc] sm:$0x30]  }
   0xc   :  { %v50_v6 = vld [vmem:[#allocation1] sm:$0x3]   ;;  %57 = vst.msk [vmem:[#allocation0 + $0x10] ss:$8 sm:$0x3] %vm51_vm0, %v54_v7  }
   0xd   :  { %52 = vst.msk [vmem:[#allocation0] ss:$8 sm:$0x3] %vm51_vm0, %v50_v6   ;;  %v63_v9 = vld.sshfl [vmem:[#allocation1] sm:$0xff pattern:$0x99999810]  }
   0xe   :  { %v77_v10 = vld [vmem:[#allocation1 + $0xc] sm:$0x30]   ;;  %v67_v11 = vsel %vm66_vm1, %v65_v8, %v63_v9 }
   0xf   :  { %v59_v12 = vld [vmem:[#allocation1 + $0x10] sm:$0x3]   ;;  %68 = vrot.lane.b32.xlu0 %v67_v11, %s151_s0  ;;  %v79_v13 = vsel %vm66_vm1, %v77_v10, %v63_v9 }
  0x10   :  { %62 = vst.msk [vmem:[#allocation0 + $0x20] ss:$8 sm:$0x3] %vm51_vm0, %v59_v12  }
  0x13   :  { %80 = vrot.lane.b32.xlu0 %v79_v13, %s152_s12 }
  0x81   :  { %v69_v14 = vpop.permute.xlu0 %68  }
  0x82   :  { %72 = vst.msk [vmem:[#allocation0 + $0x1] ss:$8 sm:$0xf] %vm51_vm0, %v69_v14   ;;  %74 = vst.msk [vmem:[#allocation0 + $0x1] ss:$8 sm:$0x30] %vm51_vm0, %v69_v14  }
  0x85   :  { %v81_v15 = vpop.permute.xlu0 %80  }
  0x86   :  { %84 = vst.msk [vmem:[#allocation0 + $0x2] ss:$8 sm:$0xf] %vm51_vm0, %v81_v15   ;;  %86 = vst.msk [vmem:[#allocation0 + $0x2] ss:$8 sm:$0x30] %vm51_vm0, %v81_v15  }
  0x8d   :  { %v92_v16 = vld [vmem:[#allocation0] sm:$0xf]  ;;  %v98_v17 = vld [vmem:[#allocation0 + $0x8] sm:$0xf]  ;;  %v105_v18 = vld [vmem:[#allocation0 + $0x10] sm:$0xf] }
  0x8e   :  { %v93_v20 = vpack.c.bf16 %v153_v19, %v92_v16  ;;  %v99_v21 = vpack.c.bf16 %v153_v19, %v98_v17  ;;  %v106_v22 = vpack.c.bf16 %v153_v19, %v105_v18  ;;  %v113_v23 = vld [vmem:[#allocation0 + $0x18] sm:$0xf]  ;;  %v121_v24 = vld [vmem:[#allocation0 + $0x20] sm:$0xf]  ;;  %v129_v25 = vld [vmem:[#allocation0 + $0x28] sm:$0xf] }
  0x8f   :  { %v114_v26 = vpack.c.bf16 %v153_v19, %v113_v23  ;;  %v122_v27 = vpack.c.bf16 %v153_v19, %v121_v24  ;;  %v130_v28 = vpack.c.bf16 %v153_v19, %v129_v25 }
  0x90   :  { %96 = vst [vmem:[%s199_s1] sm:$0x3] %v93_v20  ;;  %143 = vst [vmem:[%s199_s1 + $0x2] sm:$0x3] %v99_v21 }
  0x91   :  { %144 = vst [vmem:[%s199_s1 + $0x4] sm:$0x3] %v106_v22  ;;  %145 = vst [vmem:[%s199_s1 + $0x6] sm:$0x3] %v114_v26 }
  0x92   :  { %146 = vst [vmem:[%s199_s1 + $0x8] sm:$0x3] %v122_v27  ;;  %147 = vst [vmem:[%s199_s1 + $0xa] sm:$0x3] %v130_v28 }

// kernel: _homography_loss_impl.3
= control target key start
LH: loop header
LB: loop body
LE: loop exit
PB: predicated region body
PF: predicated region fallthrough
CT: control target
= control target key end

     0   :  { %s500_s0 = inlined_call_operand.vmem [shape: f32[32,8,128], index: 0, kind: input, shape index: {}]   ;;  %s501_s1 = inlined_call_operand.vmem [shape: f32[8,128], index: 1, kind: output, shape index: {}]  }
   0x1   :  { %v311_v0 = vld [vmem:[%s500_s0] sm:$0xff]  ;;  %v316_v1 = vld [vmem:[%s500_s0 + $0x8] sm:$0xff]  ;;  %v263_v2 = vld [vmem:[%s500_s0 + $0x58] sm:$0xff] }
   0x2   :  { %v40_v3 = vmul.f32 %v263_v2, %v311_v0  ;;  %v264_v4 = vld [vmem:[%s500_s0 + $0x60] sm:$0xff]  ;;  %v265_v6 = vld [vmem:[%s500_s0 + $0x68] sm:$0xff]  ;;  %v276_v13 = vld [vmem:[%s500_s0 + $0xb0] sm:$0xff] }
   0x3   :  { %v43_v5 = vmul.f32 %v264_v4, %v316_v1  ;;  %v274_v7 = vld [vmem:[%s500_s0 + $0xa0] sm:$0xff]  ;;  %v275_v10 = vld [vmem:[%s500_s0 + $0xa8] sm:$0xff]  ;;  %v286_v17 = vld [vmem:[%s500_s0 + $0xf0] sm:$0xff] }
   0x4   :  { %v112_v9 = vmul.f32 %v274_v7, %v311_v0  ;;  %v115_v11 = vmul.f32 %v275_v10, %v316_v1  ;;  %v285_v14 = vld [vmem:[%s500_s0 + $0xe8] sm:$0xff]  ;;  %v258_v19 = vld [vmem:[%s500_s0 + $0x30] sm:$0xff]  ;;  %v187_v21 = vmul.f32 %v286_v17, %v316_v1  ;;  %v260_v22 = vld [vmem:[%s500_s0 + $0x40] sm:$0xff] }
   0x5   :  { %v44_v8 = vadd.f32 %v43_v5, %v40_v3  ;;  %v184_v16 = vmul.f32 %v285_v14, %v311_v0  ;;  %v257_v18 = vld [vmem:[%s500_s0 + $0x28] sm:$0xff]  ;;  %v287_v25 = vld [vmem:[%s500_s0 + $0xf8] sm:$0xff]  ;;  %v23_v28 = vmul.f32 %v258_v19, %v316_v1  ;;  %v30_v30 = vmul.f32 %v260_v22, %v311_v0  ;;  %v268_v32 = vld [vmem:[%s500_s0 + $0x70] sm:$0xff] }
   0x6   :  { %v116_v15 = vadd.f32 %v115_v11, %v112_v9  ;;  %v261_v23 = vld [vmem:[%s500_s0 + $0x48] sm:$0xff]  ;;  %v20_v27 = vmul.f32 %v257_v18, %v311_v0  ;;  %v269_v33 = vld [vmem:[%s500_s0 + $0x78] sm:$0xff]  ;;  %v272_v36 = vld [vmem:[%s500_s0 + $0x90] sm:$0xff]  ;;  %v92_v38 = vmul.f32 %v268_v32, %v311_v0 }
   0x7   :  { %v47_v12 = vadd.f32 %v265_v6, %v44_v8  ;;  %v188_v26 = vadd.f32 %v187_v21, %v184_v16  ;;  %v33_v31 = vmul.f32 %v261_v23, %v316_v1  ;;  %v271_v35 = vld [vmem:[%s500_s0 + $0x88] sm:$0xff]  ;;  %v95_v39 = vmul.f32 %v269_v33, %v316_v1  ;;  %v259_v44 = vld [vmem:[%s500_s0 + $0x38] sm:$0xff]  ;;  %v262_v45 = vld [vmem:[%s500_s0 + $0x50] sm:$0xff] }
   0x8   :  { %v119_v24 = vadd.f32 %v276_v13, %v116_v15  ;;  %v24_v37 = vadd.f32 %v23_v28, %v20_v27  ;;  %v102_v41 = vmul.f32 %v271_v35, %v311_v0  ;;  %v105_v42 = vmul.f32 %v272_v36, %v316_v1  ;;  %v270_v47 = vld [vmem:[%s500_s0 + $0x80] sm:$0xff]  ;;  %v279_v51 = vld [vmem:[%s500_s0 + $0xb8] sm:$0xff]  ;;  %v282_v53 = vld [vmem:[%s500_s0 + $0xd0] sm:$0xff] }
   0x9   :  { %v48_v20 = vadd.f32 1e-10, %v47_v12  ;;  %v191_v34 = vadd.f32 %v287_v25, %v188_v26  ;;  %v34_v40 = vadd.f32 %v33_v31, %v30_v30  ;;  %v96_v46 = vadd.f32 %v95_v39, %v92_v38  ;;  %v280_v52 = vld [vmem:[%s500_s0 + $0xc0] sm:$0xff]  ;;  %v273_v54 = vld [vmem:[%s500_s0 + $0x98] sm:$0xff]  ;;  %v413_v61 = vld [vmem:[%s500_s0 + $0x10] sm:$0xff] }
   0xa   :  { %v120_v29 = vadd.f32 1e-10, %v119_v24  ;;  %v27_v48 = vadd.f32 %v259_v44, %v24_v37  ;;  %v106_v50 = vadd.f32 %v105_v42, %v102_v41  ;;  %v283_v55 = vld [vmem:[%s500_s0 + $0xd8] sm:$0xff]  ;;  %v164_v58 = vmul.f32 %v279_v51, %v311_v0  ;;  %v284_v17 = vld [vmem:[%s500_s0 + $0xe0] sm:$0xff] }
   0xb   :  { %291 = vrcp.f32 %v48_v20  ;;  %v192_v43 = vadd.f32 1e-10, %v191_v34  ;;  %v37_v49 = vadd.f32 %v262_v45, %v34_v40  ;;  %v99_v57 = vadd.f32 %v270_v47, %v96_v46  ;;  %v418_v62 = vld [vmem:[%s500_s0 + $0x18] sm:$0xff] }
   0xc   :  { %293 = vrcp.f32 %v120_v29  ;;  %v167_v59 = vmul.f32 %v280_v52, %v316_v1  ;;  %v174_v60 = vmul.f32 %v282_v53, %v311_v0  ;;  %v109_v3 = vadd.f32 %v273_v54, %v106_v50  ;;  %v424_v0 = vld [vmem:[%s500_s0 + $0x20] sm:$0xff] }
   0xd   :  { %295 = vrcp.f32 %v192_v43  ;;  %v177_v4 = vmul.f32 %v283_v55, %v316_v1  ;;  %v281_v1 = vld [vmem:[%s500_s0 + $0xc8] sm:$0xff]  ;;  %vm17_vm6 = vcmp.gt.f32.partialorder %v424_v0, 0.5  ;;  %v297_v46 = vmov 0.0  }
   0xe   :  { %v168_v10 = vadd.f32 %v167_v59, %v164_v58 }
   0xf   :  { %v178_v11 = vadd.f32 %v177_v4, %v174_v60 }
  0x10   :  { %v171_v25 = vadd.f32 %v281_v1, %v168_v10 }
  0x11   :  { %v181_v29 = vadd.f32 %v284_v17, %v178_v11 }
  0x18   :  { %v292_v56 = vpop.eup %291 }
  0x19   :  { %v51_v63 = vmul.f32 %v292_v56, %v27_v48  ;;  %v52_v2 = vmul.f32 %v292_v56, %v37_v49  ;;  %v294_v5 = vpop.eup %293 }
  0x1a   :  { %v123_v8 = vmul.f32 %v294_v5, %v99_v57  ;;  %v124_v9 = vmul.f32 %v294_v5, %v109_v3  ;;  %v296_v26 = vpop.eup %295 }
  0x1b   :  { %vm53_vm0 = vcmp.gt.f32.partialorder %v51_v63, -45.0  ;;  %vm54_vm1 = vcmp.lt.f32.partialorder %v51_v63, 45.0  ;;  %vm56_vm2 = vcmp.gt.f32.partialorder %v52_v2, 0.0  ;;  %vm58_vm4 = vcmp.lt.f32.partialorder %v52_v2, 80.0 }
  0x1c   :  { %vm55_vm3 = vmand %vm53_vm0, %vm54_vm1  ;;  %v61_v6 = vsub.f32 %v51_v63, %v413_v61  ;;  %v62_v7 = vsub.f32 %v52_v2, %v418_v62  ;;  %vm125_vm8 = vcmp.gt.f32.partialorder %v123_v8, -45.0  ;;  %vm126_vm9 = vcmp.lt.f32.partialorder %v123_v8, 45.0 }
  0x1d   :  { %vm57_vm5 = vmand %vm55_vm3, %vm56_vm2  ;;  %vm128_vm10 = vcmp.gt.f32.partialorder %v124_v9, 0.0  ;;  %v133_v24 = vsub.f32 %v123_v8, %v413_v61  ;;  %vm130_vm15 = vcmp.lt.f32.partialorder %v124_v9, 80.0  ;;  %v134_v28 = vsub.f32 %v124_v9, %v418_v62 }
  0x1e   :  { %v63_v12 = vand.u32 2147483647, %v61_v6  ;;  %v64_v13 = vand.u32 2147483647, %v62_v7  ;;  %v66_v14 = vmul.f32 0.5, %v61_v6  ;;  %v71_v15 = vmul.f32 0.5, %v62_v7  ;;  %vm432_vm7 = vmand %vm57_vm5, %vm58_vm4 }
  0x1f   :  { %vm127_vm13 = vmand %vm125_vm8, %vm126_vm9  ;;  %v135_v32 = vand.u32 2147483647, %v133_v24  ;;  %v138_v33 = vmul.f32 0.5, %v133_v24  ;;  %v136_v35 = vand.u32 2147483647, %v134_v28  ;;  %v143_v36 = vmul.f32 0.5, %v134_v28 }
  0x20   :  { %vm439_vm11 = vcmp.lt.f32.partialorder %v63_v12, 1.0  ;;  %v67_v19 = vmul.f32 %v66_v14, %v61_v6  ;;  %v266_v20 = vadd.f32 -0.5, %v63_v12  ;;  %vm443_vm12 = vcmp.lt.f32.partialorder %v64_v13, 1.0  ;;  %vm129_vm14 = vmand %vm127_vm13, %vm128_vm10 }
  0x21   :  { %v72_v22 = vmul.f32 %v71_v15, %v62_v7  ;;  %v267_v23 = vadd.f32 -0.5, %v64_v13  ;;  %vm455_vm0 = vmand %vm432_vm7, %vm17_vm6  ;;  %vm461_vm2 = vcmp.lt.f32.partialorder %v135_v32, 1.0  ;;  %v139_v38 = vmul.f32 %v138_v33, %v133_v24 }
  0x22   :  { %v69_v27 = vsel %vm439_vm11, %v67_v19, %v266_v20  ;;  %vm131_vm1 = vmand %vm129_vm14, %vm130_vm15  ;;  %v277_v39 = vadd.f32 -0.5, %v135_v32  ;;  %v195_v40 = vmul.f32 %v296_v26, %v171_v25  ;;  %vm467_vm3 = vcmp.lt.f32.partialorder %v136_v35, 1.0 }
  0x23   :  { %v74_v31 = vsel %vm443_vm12, %v72_v22, %v267_v23  ;;  %v144_v43 = vmul.f32 %v143_v36, %v134_v28  ;;  %v196_v44 = vmul.f32 %v296_v26, %v181_v29  ;;  %v83_v47 = vsel %vm455_vm0, 1.0, %v297_v46  ;;  %vm132_vm4 = vmand %vm131_vm1, %vm17_vm6 }
  0x24   :  { %v75_v34 = vadd.f32 %v74_v31, %v69_v27  ;;  %v141_v48 = vsel %vm461_vm2, %v139_v38, %v277_v39  ;;  %v278_v49 = vadd.f32 -0.5, %v136_v35  ;;  %vm197_vm5 = vcmp.gt.f32.partialorder %v195_v40, -45.0 }
  0x25   :  { %vm198_vm7 = vcmp.lt.f32.partialorder %v195_v40, 45.0  ;;  %vm200_vm8 = vcmp.gt.f32.partialorder %v196_v44, 0.0  ;;  %v155_v51 = vsel %vm132_vm4, 1.0, %v297_v46  ;;  %vm202_vm10 = vcmp.lt.f32.partialorder %v196_v44, 80.0 }
  0x26   :  { %v76_v41 = vsel %vm455_vm0, %v75_v34, 0.0  ;;  %v146_v50 = vsel %vm467_vm3, %v144_v43, %v278_v49  ;;  %vm199_vm9 = vmand %vm197_vm5, %vm198_vm7  ;;  %v84_v52 = vrot.slane %v83_v47, 4  ;;  %v205_v54 = vsub.f32 %v195_v40, %v413_v61 }
  0x27   :  { %v77_v45 = vrot.slane %v76_v41, 4  ;;  %v147_v53 = vadd.f32 %v146_v50, %v141_v48  ;;  %vm201_vm11 = vmand %vm199_vm9, %vm200_vm8  ;;  %v206_v55 = vsub.f32 %v196_v44, %v418_v62  ;;  %v156_v58 = vrot.slane %v155_v51, 4 }
  0x28   :  { %vm203_vm12 = vmand %vm201_vm11, %vm202_vm10  ;;  %v207_v59 = vand.u32 2147483647, %v205_v54  ;;  %v210_v2 = vmul.f32 0.5, %v205_v54  ;;  %v85_v3 = vadd.f32 %v84_v52, %v83_v47  ;;  %vm236_vm0 = vcmask 1041408  }
  0x29   :  { %v78_v56 = vadd.f32 %v77_v45, %v76_v41  ;;  %v148_v57 = vsel %vm132_vm4, %v147_v53, 0.0  ;;  %v208_v60 = vand.u32 2147483647, %v206_v55  ;;  %v215_v6 = vmul.f32 0.5, %v206_v55  ;;  %vm487_vm14 = vmand %vm203_vm12, %vm17_vm6 }
  0x2a   :  { %v149_v63 = vrot.slane %v148_v57, 4  ;;  %vm481_vm13 = vcmp.lt.f32.partialorder %v207_v59, 1.0  ;;  %v288_v5 = vadd.f32 -0.5, %v207_v59  ;;  %v211_v62 = vmul.f32 %v210_v2, %v205_v54 }
  0x2b   :  { %v79_v7 = vrot.slane %v78_v56, 2  ;;  %vm214_vm15 = vcmp.lt.f32.partialorder %v208_v60, 1.0  ;;  %v157_v9 = vadd.f32 %v156_v58, %v155_v51  ;;  %v216_v10 = vmul.f32 %v215_v6, %v206_v55 }
  0x2c   :  { %v150_v8 = vadd.f32 %v149_v63, %v148_v57  ;;  %v289_v1 = vadd.f32 -0.5, %v208_v60  ;;  %v227_v11 = vsel %vm487_vm14, 1.0, %v297_v46  ;;  %v213_v13 = vsel %vm481_vm13, %v211_v62, %v288_v5 }
  0x2d   :  { %v228_v15 = vrot.slane %v227_v11, 4  ;;  %v80_v16 = vadd.f32 %v79_v7, %v78_v56  ;;  %v86_v0 = vrot.slane %v85_v3, 2  ;;  %v158_v19 = vrot.slane %v157_v9, 2 }
  0x2e   :  { %v151_v12 = vrot.slane %v150_v8, 2  ;;  %v218_v14 = vsel %vm214_vm15, %v216_v10, %v289_v1  ;;  %vm234_vm6 = vcmask 1040384   ;;  %vm238_vm1 = vcmask 1042432  }
  0x2f   :  { %v219_v18 = vadd.f32 %v218_v14, %v213_v13  ;;  %v229_v20 = vadd.f32 %v228_v15, %v227_v11  ;;  %v81_v24 = vrot.slane %v80_v16, 1  ;;  %v87_v25 = vadd.f32 %v86_v0, %v85_v3 }
  0x30   :  { %v152_v17 = vadd.f32 %v151_v12, %v150_v8  ;;  %v159_v27 = vadd.f32 %v158_v19, %v157_v9  ;;  %vm240_vm2 = vcmask 1043456   ;;  %vm242_vm3 = vcmask 1044480  }
  0x31   :  { %v220_v21 = vsel %vm487_vm14, %v219_v18, 0.0  ;;  %v230_v23 = vrot.slane %v229_v20, 2  ;;  %v82_v31 = vadd.f32 %v81_v24, %v80_v16  ;;  %v88_v32 = vrot.slane %v87_v25, 1 }
  0x32   :  { %v221_v22 = vrot.slane %v220_v21, 4  ;;  %v153_v26 = vrot.slane %v152_v17, 1  ;;  %v160_v34 = vrot.slane %v159_v27, 1  ;;  %vm244_vm4 = vcmask 1045504  }
  0x33   :  { %v231_v29 = vadd.f32 %v230_v23, %v229_v20  ;;  %v89_v38 = vadd.f32 %v88_v32, %v87_v25  ;;  %vm246_vm5 = vcmask 1046528  }
  0x34   :  { %v222_v28 = vadd.f32 %v221_v22, %v220_v21  ;;  %v154_v33 = vadd.f32 %v153_v26, %v152_v17  ;;  %v161_v40 = vadd.f32 %v160_v34, %v159_v27 }
  0x35   :  { %v232_v36 = vrot.slane %v231_v29, 1 }
  0x36   :  { %v223_v30 = vrot.slane %v222_v28, 2  ;;  %v235_v39 = vsel %vm234_vm6, %v82_v31, %v154_v33 }
  0x37   :  { %v233_v42 = vadd.f32 %v232_v36, %v231_v29 }
  0x38   :  { %v224_v35 = vadd.f32 %v223_v30, %v222_v28 }
  0x3a   :  { %v225_v37 = vrot.slane %v224_v35, 1 }
  0x3c   :  { %v226_v41 = vadd.f32 %v225_v37, %v224_v35 }
  0x3e   :  { %v237_v43 = vsel %vm236_vm0, %v235_v39, %v226_v41 }
  0x3f   :  { %v239_v44 = vsel %vm238_vm1, %v237_v43, %v89_v38 }
  0x40   :  { %v241_v45 = vsel %vm240_vm2, %v239_v44, %v161_v40 }
  0x41   :  { %v243_v46 = vsel %vm242_vm3, %v241_v45, %v233_v42 }
  0x42   :  { %v245_v47 = vsel %vm244_vm4, %v243_v46, 0.0 }
  0x43   :  { %v247_v48 = vsel %vm246_vm5, %v245_v47, 0.0 }
  0x44   :  { %248 = vst [vmem:[%s501_s1] sm:$0xff] %v247_v48 }

</bundles_post_ra>
